<compile_context>
chip_gen: v6e
topology: v6e:2x2x1
jax: 0.10.0
libtpu: 0.0.40
codegen_flags: <defaults>
</compile_context>

<pallas_src>
import functools
import math

import jax
import jax.numpy as jnp
from jax.experimental import pallas as pl
from jax.experimental.pallas import tpu as pltpu


# ----------------------------- model constants -----------------------------

VOCAB = 128
MAX_POS = 32
HIDDEN = 128          # multiple of 128 -> lane-dense tiles
NUM_HEADS = 2
HEAD_DIM = HIDDEN // NUM_HEADS
INTERMEDIATE = 256    # multiple of 128
NUM_LAYERS = 2
LN_EPS = 1e-12        # BERT default


# ----------------------------- shared math helpers -----------------------------

def _layernorm(h, gamma, beta):
    mu = jnp.mean(h, axis=-1, keepdims=True)
    d = h - mu
    var = jnp.mean(d * d, axis=-1, keepdims=True)
    return d * jax.lax.rsqrt(var + LN_EPS) * gamma + beta


def _gelu(y):
    # TODO(synk): HF BERT uses exact erf-GELU; tanh approximation used here.
    c = math.sqrt(2.0 / math.pi)
    return 0.5 * y * (1.0 + jnp.tanh(c * (y + 0.044715 * y * y * y)))


# ----------------------------- fused encoder kernel -----------------------------

def _encoder_kernel(
    # per-batch inputs
    emb_ref,      # (1, S, H)   embeddings (word+pos+type), pre-LN
    maskb_ref,    # (1, 1, S)   additive key mask: 0 keep / -10000 pad
    # embedding LayerNorm params (layer-independent)
    eg_ref,       # (1, H)
    eb_ref,       # (1, H)
    # per-layer stacked weights (leading dim indexed by the layer grid axis)
    qkv_w_ref,    # (1, H, 3H)  attention scale folded into the Q third
    qkv_b_ref,    # (1, 1, 3H)
    ow_ref,       # (1, H, H)
    ob_ref,       # (1, 1, H)
    ln1g_ref,     # (1, 1, H)
    ln1b_ref,     # (1, 1, H)
    fiw_ref,      # (1, H, I)
    fib_ref,      # (1, 1, I)
    fow_ref,      # (1, I, H)
    fob_ref,      # (1, 1, H)
    ln2g_ref,     # (1, 1, H)
    ln2b_ref,     # (1, 1, H)
    # output
    out_ref,      # (1, S, H)
    # scratch: activations resident in VMEM across the layer axis
    x_ref,        # (S, H)
    *, num_heads, head_dim):

    layer = pl.program_id(1)
    hidden = num_heads * head_dim

    # Layer 0: embedding LayerNorm (no residual) into the resident scratch.
    @pl.when(layer == 0)
    def _():
        x_ref[...] = _layernorm(emb_ref[0], eg_ref[...], eb_ref[...])

    x = x_ref[...]                                            # (S, H)
    mask_bias = maskb_ref[0]                                  # (1, S)

    # ---- fused Q/K/V projection (one MXU pass, lane dim 3H = 384) ----
    qkv = (jnp.dot(x, qkv_w_ref[0], preferred_element_type=jnp.float32)
           + qkv_b_ref[0])                                    # (S, 3H)

    # ---- multi-head self-attention: all heads of this batch in one step ----
    # Output projection is fused as a sum of per-head matmuls against
    # row-slices of W_o (equivalent to concat(ctx_heads) @ W_o).
    ow = ow_ref[0]                                            # (H, H)
    attn = ob_ref[0]                                          # (1, H) bias
    for h in range(num_heads):
        lo = h * head_dim
        q = qkv[:, lo:lo + head_dim]                          # (S, Dh) pre-scaled
        k = qkv[:, hidden + lo:hidden + lo + head_dim]        # (S, Dh)
        v = qkv[:, 2 * hidden + lo:2 * hidden + lo + head_dim]

        s = jax.lax.dot_general(q, k, (((1,), (1,)), ((), ())),
                                preferred_element_type=jnp.float32)  # (S, S)
        s = s + mask_bias
        s = s - jnp.max(s, axis=-1, keepdims=True)
        p = jnp.exp(s)
        p = p * pl.reciprocal(jnp.sum(p, axis=-1, keepdims=True), approx=True)

        ctx_h = jnp.dot(p, v, preferred_element_type=jnp.float32)    # (S, Dh)
        attn = attn + jnp.dot(ctx_h, ow[lo:lo + head_dim, :],
                              preferred_element_type=jnp.float32)

    # ---- residual + LayerNorm (attention block epilogue) ----
    x = _layernorm(attn + x, ln1g_ref[0], ln1b_ref[0])

    # ---- FFN: GELU(x W1 + b1) W2 + b2, then residual + LayerNorm ----
    h1 = (jnp.dot(x, fiw_ref[0], preferred_element_type=jnp.float32)
          + fib_ref[0])
    h1 = _gelu(h1)
    ffn = (jnp.dot(h1, fow_ref[0], preferred_element_type=jnp.float32)
           + fob_ref[0])
    x = _layernorm(ffn + x, ln2g_ref[0], ln2b_ref[0])

    # Keep activations resident for the next layer iteration.
    x_ref[...] = x

    # Final layer: write last_hidden_state for this batch element.
    @pl.when(layer == pl.num_programs(1) - 1)
    def _():
        out_ref[0] = x


# ----------------------------- wrapper -----------------------------

def long_answer_encoder(params, long_answer, long_answer_mask):
    """Forward pass: returns last_hidden_state of shape (B, S, HIDDEN)."""
    B, S = long_answer.shape
    H, I, L = HIDDEN, INTERMEDIATE, NUM_LAYERS

    # --- glue (plain JAX): embedding gather + additive mask, both tiny ---
    emb = (params["word_emb"][long_answer]
           + params["pos_emb"][:S][None, :, :]
           + params["type_emb"][0][None, None, :])            # (B, S, H)
    mask_bias = ((long_answer_mask.astype(jnp.float32) - 1.0) * 10000.0
                 ).reshape(B, 1, S)                            # 0 keep / -1e4 pad

    # Fold the attention scale 1/sqrt(Dh) into the Q projection weights/bias.
    scale = 1.0 / math.sqrt(HEAD_DIM)
    qscale = jnp.concatenate([jnp.full((H,), scale, jnp.float32),
                              jnp.ones((2 * H,), jnp.float32)])
    qkv_w = params["qkv_w"] * qscale[None, None, :]
    qkv_b = (params["qkv_b"] * qscale[None, :]).reshape(L, 1, 3 * H)

    o_w = params["o_w"]
    o_b = params["o_b"].reshape(L, 1, H)
    ln1_g = params["ln1_g"].reshape(L, 1, H)
    ln1_b = params["ln1_b"].reshape(L, 1, H)
    fi_w = params["ffn_in_w"]
    fi_b = params["ffn_in_b"].reshape(L, 1, I)
    fo_w = params["ffn_out_w"]
    fo_b = params["ffn_out_b"].reshape(L, 1, H)
    ln2_g = params["ln2_g"].reshape(L, 1, H)
    ln2_b = params["ln2_b"].reshape(L, 1, H)
    emb_g = params["emb_ln_g"].reshape(1, H)
    emb_b = params["emb_ln_b"].reshape(1, H)

    def batch_spec(a):   # per-batch blocks, constant across the layer axis
        return pl.BlockSpec((1,) + a.shape[1:], lambda b, l: (b, 0, 0))

    def layer_spec(a):   # per-layer stacked weights
        return pl.BlockSpec((1,) + a.shape[1:], lambda b, l: (l, 0, 0))

    const_spec = pl.BlockSpec((1, H), lambda b, l: (0, 0))

    kern = functools.partial(_encoder_kernel,
                             num_heads=NUM_HEADS, head_dim=HEAD_DIM)

    return pl.pallas_call(
        kern,
        out_shape=jax.ShapeDtypeStruct((B, S, H), jnp.float32),
        grid_spec=pltpu.PrefetchScalarGridSpec(
            num_scalar_prefetch=0,
            grid=(B, L),                      # batch parallel, layers sequential
            in_specs=[
                batch_spec(emb), batch_spec(mask_bias),
                const_spec, const_spec,
                layer_spec(qkv_w), layer_spec(qkv_b),
                layer_spec(o_w), layer_spec(o_b),
                layer_spec(ln1_g), layer_spec(ln1_b),
                layer_spec(fi_w), layer_spec(fi_b),
                layer_spec(fo_w), layer_spec(fo_b),
                layer_spec(ln2_g), layer_spec(ln2_b),
            ],
            out_specs=pl.BlockSpec((1, S, H), lambda b, l: (b, 0, 0)),
            scratch_shapes=[pltpu.VMEM((S, H), jnp.float32)],
        ),
        compiler_params=pltpu.CompilerParams(
            dimension_semantics=("parallel", "arbitrary")),
    )(emb, mask_bias, emb_g, emb_b,
      qkv_w, qkv_b, o_w, o_b, ln1_g, ln1_b,
      fi_w, fi_b, fo_w, fo_b, ln2_g, ln2_b)


# ----------------------------- params + pure-JAX reference -----------------------------

def init_params(key):
    def normal(k, shape, scale=0.02):
        return scale * jax.random.normal(k, shape, dtype=jnp.float32)

    H, I, L = HIDDEN, INTERMEDIATE, NUM_LAYERS
    keys = jax.random.split(key, 7)
    return {
        "word_emb": normal(keys[0], (VOCAB, H)),
        "pos_emb": normal(keys[1], (MAX_POS, H)),
        "type_emb": normal(keys[2], (2, H)),
        "emb_ln_g": jnp.ones((H,), jnp.float32),
        "emb_ln_b": jnp.zeros((H,), jnp.float32),
        "qkv_w": normal(keys[3], (L, H, 3 * H)),
        "qkv_b": jnp.zeros((L, 3 * H), jnp.float32),
        "o_w": normal(keys[4], (L, H, H)),
        "o_b": jnp.zeros((L, H), jnp.float32),
        "ln1_g": jnp.ones((L, H), jnp.float32),
        "ln1_b": jnp.zeros((L, H), jnp.float32),
        "ffn_in_w": normal(keys[5], (L, H, I)),
        "ffn_in_b": jnp.zeros((L, I), jnp.float32),
        "ffn_out_w": normal(keys[6], (L, I, H)),
        "ffn_out_b": jnp.zeros((L, H), jnp.float32),
        "ln2_g": jnp.ones((L, H), jnp.float32),
        "ln2_b": jnp.zeros((L, H), jnp.float32),
    }


def _reference_encoder(params, long_answer, long_answer_mask):
    """Pure-JAX reference of the same synthetic BERT (for correctness check)."""
    B, S = long_answer.shape
    H = HIDDEN
    mask_bias = (long_answer_mask.astype(jnp.float32) - 1.0) * 10000.0  # (B, S)
    x = (params["word_emb"][long_answer]
         + params["pos_emb"][:S][None, :, :]
         + params["type_emb"][0][None, None, :])
    x = _layernorm(x, params["emb_ln_g"], params["emb_ln_b"])
    scale = 1.0 / math.sqrt(HEAD_DIM)
    for l in range(NUM_LAYERS):
        qkv = jnp.einsum("bsh,hk->bsk", x, params["qkv_w"][l]) + params["qkv_b"][l]
        q, k, v = jnp.split(qkv, 3, axis=-1)
        q = q.reshape(B, S, NUM_HEADS, HEAD_DIM).transpose(0, 2, 1, 3) * scale
        k = k.reshape(B, S, NUM_HEADS, HEAD_DIM).transpose(0, 2, 1, 3)
        v = v.reshape(B, S, NUM_HEADS, HEAD_DIM).transpose(0, 2, 1, 3)
        s = jnp.einsum("bhqd,bhkd->bhqk", q, k) + mask_bias[:, None, None, :]
        p = jax.nn.softmax(s, axis=-1)
        ctx = jnp.einsum("bhqk,bhkd->bhqd", p, v).transpose(0, 2, 1, 3)
        ctx = ctx.reshape(B, S, H)
        attn = ctx @ params["o_w"][l] + params["o_b"][l]
        x = _layernorm(attn + x, params["ln1_g"][l], params["ln1_b"][l])
        h1 = _gelu(x @ params["ffn_in_w"][l] + params["ffn_in_b"][l])
        ffn = h1 @ params["ffn_out_w"][l] + params["ffn_out_b"][l]
        x = _layernorm(ffn + x, params["ln2_g"][l], params["ln2_b"][l])
    return x


# ----------------------------------- main -----------------------------------

if __name__ == "__main__":
    B, S = 2, 16
    root = jax.random.PRNGKey(0)
    k_param, k_ids = jax.random.split(root)

    params = init_params(k_param)

    long_answer = jax.random.randint(k_ids, (B, S), 0, VOCAB, dtype=jnp.int32)
    # batch 0 fully valid; batch 1 has 4 padding tokens at the end
    long_answer_mask = jnp.ones((B, S), dtype=jnp.int32).at[1, S - 4:].set(0)

    encoder = jax.jit(long_answer_encoder)
    a_embeds = jax.block_until_ready(
        encoder(params, long_answer, long_answer_mask))

    assert a_embeds.shape == (B, S, HIDDEN)
    assert a_embeds.dtype == jnp.float32
    assert bool(jnp.all(jnp.isfinite(a_embeds)))

    ref = _reference_encoder(params, long_answer, long_answer_mask)
    max_err = float(jnp.max(jnp.abs(a_embeds - ref)))
    assert bool(jnp.allclose(a_embeds, ref, rtol=2e-2, atol=2e-2)), max_err

    print("KERNEL_OK")
</pallas_src>

<mosaic_0001>
module attributes {stable_mosaic.version = 11 : i64} {
  func.func @_encoder_kernel(%arg0: i32, %arg1: i32, %arg2: memref<1x16x128xf32, #tpu.memory_space<vmem>>, %arg3: memref<1x1x16xf32, #tpu.memory_space<vmem>>, %arg4: memref<1x128xf32, #tpu.memory_space<vmem>>, %arg5: memref<1x128xf32, #tpu.memory_space<vmem>>, %arg6: memref<1x128x384xf32, #tpu.memory_space<vmem>>, %arg7: memref<1x1x384xf32, #tpu.memory_space<vmem>>, %arg8: memref<1x128x128xf32, #tpu.memory_space<vmem>>, %arg9: memref<1x1x128xf32, #tpu.memory_space<vmem>>, %arg10: memref<1x1x128xf32, #tpu.memory_space<vmem>>, %arg11: memref<1x1x128xf32, #tpu.memory_space<vmem>>, %arg12: memref<1x128x256xf32, #tpu.memory_space<vmem>>, %arg13: memref<1x1x256xf32, #tpu.memory_space<vmem>>, %arg14: memref<1x256x128xf32, #tpu.memory_space<vmem>>, %arg15: memref<1x1x128xf32, #tpu.memory_space<vmem>>, %arg16: memref<1x1x128xf32, #tpu.memory_space<vmem>>, %arg17: memref<1x1x128xf32, #tpu.memory_space<vmem>>, %arg18: memref<1x16x128xf32, #tpu.memory_space<vmem>>, %arg19: memref<16x128xf32, #tpu.memory_space<vmem>>) attributes {dimension_semantics = [#tpu.dimension_semantics<parallel>, #tpu.dimension_semantics<arbitrary>], iteration_bounds = array<i64: 2, 2>, scalar_prefetch = 0 : i64, scratch_operands = 1 : i64, tpu.core_type = #tpu.core_type<tc>, window_params = [{transform_indices = @transform_0, window_bounds = array<i64: 1, 16, 128>}, {transform_indices = @transform_1, window_bounds = array<i64: 1, 1, 16>}, {pipeline_mode = #tpu.pipeline_mode<synchronous>, transform_indices = @transform_2, window_bounds = array<i64: 1, 128>}, {pipeline_mode = #tpu.pipeline_mode<synchronous>, transform_indices = @transform_3, window_bounds = array<i64: 1, 128>}, {transform_indices = @transform_4, window_bounds = array<i64: 1, 128, 384>}, {transform_indices = @transform_5, window_bounds = array<i64: 1, 1, 384>}, {transform_indices = @transform_6, window_bounds = array<i64: 1, 128, 128>}, {transform_indices = @transform_7, window_bounds = array<i64: 1, 1, 128>}, {transform_indices = @transform_8, window_bounds = array<i64: 1, 1, 128>}, {transform_indices = @transform_9, window_bounds = array<i64: 1, 1, 128>}, {transform_indices = @transform_10, window_bounds = array<i64: 1, 128, 256>}, {transform_indices = @transform_11, window_bounds = array<i64: 1, 1, 256>}, {transform_indices = @transform_12, window_bounds = array<i64: 1, 256, 128>}, {transform_indices = @transform_13, window_bounds = array<i64: 1, 1, 128>}, {transform_indices = @transform_14, window_bounds = array<i64: 1, 1, 128>}, {transform_indices = @transform_15, window_bounds = array<i64: 1, 1, 128>}, {transform_indices = @transform_16, window_bounds = array<i64: 1, 16, 128>}]} {
    %c0_i32 = arith.constant 0 : i32
    %0 = arith.cmpi eq, %arg1, %c0_i32 : i32
    %1 = arith.extui %0 : i1 to i32
    %c0_i32_0 = arith.constant 0 : i32
    %2 = arith.cmpi ne, %1, %c0_i32_0 : i32
    scf.if %2 {
      %c0_70 = arith.constant 0 : index
      %c0_71 = arith.constant 0 : index
      %c0_72 = arith.constant 0 : index
      %139 = vector.load %arg2[%c0_70, %c0_71, %c0_72] : memref<1x16x128xf32, #tpu.memory_space<vmem>>, vector<1x16x128xf32>
      %140 = vector.shape_cast %139 : vector<1x16x128xf32> to vector<16x128xf32>
      %c0_73 = arith.constant 0 : index
      %c0_74 = arith.constant 0 : index
      %141 = vector.load %arg4[%c0_73, %c0_74] : memref<1x128xf32, #tpu.memory_space<vmem>>, vector<1x128xf32>
      %c0_75 = arith.constant 0 : index
      %c0_76 = arith.constant 0 : index
      %142 = vector.load %arg5[%c0_75, %c0_76] : memref<1x128xf32, #tpu.memory_space<vmem>>, vector<1x128xf32>
      %cst_77 = arith.constant dense<0.000000e+00> : vector<16xf32>
      %143 = vector.multi_reduction <add>, %140, %cst_77 [1] : vector<16x128xf32> to vector<16xf32>
      %144 = vector.shape_cast %143 : vector<16xf32> to vector<16x1xf32>
      %cst_78 = arith.constant 1.280000e+02 : f32
      %145 = vector.broadcast %cst_78 : f32 to vector<16x1xf32>
      %146 = arith.divf %144, %145 : vector<16x1xf32>
      %147 = vector.broadcast %146 : vector<16x1xf32> to vector<16x128xf32>
      %148 = arith.subf %140, %147 : vector<16x128xf32>
      %149 = arith.mulf %148, %148 : vector<16x128xf32>
      %cst_79 = arith.constant dense<0.000000e+00> : vector<16xf32>
      %150 = vector.multi_reduction <add>, %149, %cst_79 [1] : vector<16x128xf32> to vector<16xf32>
      %151 = vector.shape_cast %150 : vector<16xf32> to vector<16x1xf32>
      %cst_80 = arith.constant 1.280000e+02 : f32
      %152 = vector.broadcast %cst_80 : f32 to vector<16x1xf32>
      %153 = arith.divf %151, %152 : vector<16x1xf32>
      %cst_81 = arith.constant 9.99999996E-13 : f32
      %154 = vector.broadcast %cst_81 : f32 to vector<16x1xf32>
      %155 = arith.addf %153, %154 : vector<16x1xf32>
      %156 = math.rsqrt %155 : vector<16x1xf32>
      %157 = vector.broadcast %156 : vector<16x1xf32> to vector<16x128xf32>
      %158 = arith.mulf %148, %157 : vector<16x128xf32>
      %159 = vector.broadcast %141 : vector<1x128xf32> to vector<16x128xf32>
      %160 = arith.mulf %158, %159 : vector<16x128xf32>
      %161 = vector.broadcast %142 : vector<1x128xf32> to vector<16x128xf32>
      %162 = arith.addf %160, %161 : vector<16x128xf32>
      %c0_82 = arith.constant 0 : index
      %c0_83 = arith.constant 0 : index
      %163 = vector.load %arg19[%c0_82, %c0_83] : memref<16x128xf32, #tpu.memory_space<vmem>>, vector<16x128xf32>
      tpu.vector_store %arg19[%c0_82, %c0_83], %162 {strides = array<i32>} : memref<16x128xf32, #tpu.memory_space<vmem>>, vector<16x128xf32>,
    } else {
    }
    %c0 = arith.constant 0 : index
    %c0_1 = arith.constant 0 : index
    %3 = vector.load %arg19[%c0, %c0_1] : memref<16x128xf32, #tpu.memory_space<vmem>>, vector<16x128xf32>
    %c0_2 = arith.constant 0 : index
    %c0_3 = arith.constant 0 : index
    %c0_4 = arith.constant 0 : index
    %4 = vector.load %arg3[%c0_2, %c0_3, %c0_4] : memref<1x1x16xf32, #tpu.memory_space<vmem>>, vector<1x1x16xf32>
    %5 = vector.shape_cast %4 : vector<1x1x16xf32> to vector<1x16xf32>
    %c0_5 = arith.constant 0 : index
    %c0_6 = arith.constant 0 : index
    %c0_7 = arith.constant 0 : index
    %6 = vector.load %arg6[%c0_5, %c0_6, %c0_7] : memref<1x128x384xf32, #tpu.memory_space<vmem>>, vector<1x128x384xf32>
    %7 = vector.shape_cast %6 : vector<1x128x384xf32> to vector<128x384xf32>
    %cst = arith.constant dense<0.000000e+00> : vector<16x384xf32>
    %8 = tpu.matmul %3, %7, %cst {dimension_numbers = #tpu.dot_dimension_numbers<[1], [0], [0], [1], [0, 0, 1, 1], [], []>} : vector<16x128xf32>, vector<128x384xf32>, vector<16x384xf32> -> vector<16x384xf32>
    %c0_8 = arith.constant 0 : index
    %c0_9 = arith.constant 0 : index
    %c0_10 = arith.constant 0 : index
    %9 = vector.load %arg7[%c0_8, %c0_9, %c0_10] : memref<1x1x384xf32, #tpu.memory_space<vmem>>, vector<1x1x384xf32>
    %10 = vector.shape_cast %9 : vector<1x1x384xf32> to vector<1x384xf32>
    %11 = vector.broadcast %10 : vector<1x384xf32> to vector<16x384xf32>
    %12 = arith.addf %8, %11 : vector<16x384xf32>
    %c0_11 = arith.constant 0 : index
    %c0_12 = arith.constant 0 : index
    %c0_13 = arith.constant 0 : index
    %13 = vector.load %arg8[%c0_11, %c0_12, %c0_13] : memref<1x128x128xf32, #tpu.memory_space<vmem>>, vector<1x128x128xf32>
    %14 = vector.shape_cast %13 : vector<1x128x128xf32> to vector<128x128xf32>
    %c0_14 = arith.constant 0 : index
    %c0_15 = arith.constant 0 : index
    %c0_16 = arith.constant 0 : index
    %15 = vector.load %arg9[%c0_14, %c0_15, %c0_16] : memref<1x1x128xf32, #tpu.memory_space<vmem>>, vector<1x1x128xf32>
    %16 = vector.shape_cast %15 : vector<1x1x128xf32> to vector<1x128xf32>
    %17 = vector.extract_strided_slice %12 {offsets = [0, 0], sizes = [16, 64], strides = [1, 1]} : vector<16x384xf32> to vector<16x64xf32>
    %18 = vector.extract_strided_slice %12 {offsets = [0, 128], sizes = [16, 64], strides = [1, 1]} : vector<16x384xf32> to vector<16x64xf32>
    %19 = vector.extract_strided_slice %12 {offsets = [0, 256], sizes = [16, 64], strides = [1, 1]} : vector<16x384xf32> to vector<16x64xf32>
    %cst_17 = arith.constant dense<0.000000e+00> : vector<16x16xf32>
    %20 = tpu.matmul %17, %18, %cst_17 {dimension_numbers = #tpu.dot_dimension_numbers<[1], [1], [0], [0], [0, 0, 1, 0], [], []>} : vector<16x64xf32>, vector<16x64xf32>, vector<16x16xf32> -> vector<16x16xf32>
    %21 = vector.broadcast %5 : vector<1x16xf32> to vector<16x16xf32>
    %22 = arith.addf %20, %21 : vector<16x16xf32>
    %cst_18 = arith.constant dense<0xFF800000> : vector<16xf32>
    %23 = vector.multi_reduction <maximumf>, %22, %cst_18 [1] : vector<16x16xf32> to vector<16xf32>
    %24 = vector.shape_cast %23 : vector<16xf32> to vector<16x1xf32>
    %25 = vector.broadcast %24 : vector<16x1xf32> to vector<16x16xf32>
    %26 = arith.subf %22, %25 : vector<16x16xf32>
    %27 = math.exp %26 : vector<16x16xf32>
    %cst_19 = arith.constant dense<0.000000e+00> : vector<16xf32>
    %28 = vector.multi_reduction <add>, %27, %cst_19 [1] : vector<16x16xf32> to vector<16xf32>
    %29 = vector.shape_cast %28 : vector<16xf32> to vector<16x1xf32>
    %30 = tpu.reciprocal %29 {approx = true} : vector<16x1xf32> -> vector<16x1xf32>
    %31 = vector.broadcast %30 : vector<16x1xf32> to vector<16x16xf32>
    %32 = arith.mulf %27, %31 : vector<16x16xf32>
    %cst_20 = arith.constant dense<0.000000e+00> : vector<16x64xf32>
    %33 = tpu.matmul %32, %19, %cst_20 {dimension_numbers = #tpu.dot_dimension_numbers<[1], [0], [0], [1], [0, 0, 1, 1], [], []>} : vector<16x16xf32>, vector<16x64xf32>, vector<16x64xf32> -> vector<16x64xf32>
    %34 = vector.extract_strided_slice %14 {offsets = [0, 0], sizes = [64, 128], strides = [1, 1]} : vector<128x128xf32> to vector<64x128xf32>
    %cst_21 = arith.constant dense<0.000000e+00> : vector<16x128xf32>
    %35 = tpu.matmul %33, %34, %cst_21 {dimension_numbers = #tpu.dot_dimension_numbers<[1], [0], [0], [1], [0, 0, 1, 1], [], []>} : vector<16x64xf32>, vector<64x128xf32>, vector<16x128xf32> -> vector<16x128xf32>
    %36 = vector.broadcast %16 : vector<1x128xf32> to vector<16x128xf32>
    %37 = arith.addf %36, %35 : vector<16x128xf32>
    %38 = vector.extract_strided_slice %12 {offsets = [0, 64], sizes = [16, 64], strides = [1, 1]} : vector<16x384xf32> to vector<16x64xf32>
    %39 = vector.extract_strided_slice %12 {offsets = [0, 192], sizes = [16, 64], strides = [1, 1]} : vector<16x384xf32> to vector<16x64xf32>
    %40 = vector.extract_strided_slice %12 {offsets = [0, 320], sizes = [16, 64], strides = [1, 1]} : vector<16x384xf32> to vector<16x64xf32>
    %cst_22 = arith.constant dense<0.000000e+00> : vector<16x16xf32>
    %41 = tpu.matmul %38, %39, %cst_22 {dimension_numbers = #tpu.dot_dimension_numbers<[1], [1], [0], [0], [0, 0, 1, 0], [], []>} : vector<16x64xf32>, vector<16x64xf32>, vector<16x16xf32> -> vector<16x16xf32>
    %42 = vector.broadcast %5 : vector<1x16xf32> to vector<16x16xf32>
    %43 = arith.addf %41, %42 : vector<16x16xf32>
    %cst_23 = arith.constant dense<0xFF800000> : vector<16xf32>
    %44 = vector.multi_reduction <maximumf>, %43, %cst_23 [1] : vector<16x16xf32> to vector<16xf32>
    %45 = vector.shape_cast %44 : vector<16xf32> to vector<16x1xf32>
    %46 = vector.broadcast %45 : vector<16x1xf32> to vector<16x16xf32>
    %47 = arith.subf %43, %46 : vector<16x16xf32>
    %48 = math.exp %47 : vector<16x16xf32>
    %cst_24 = arith.constant dense<0.000000e+00> : vector<16xf32>
    %49 = vector.multi_reduction <add>, %48, %cst_24 [1] : vector<16x16xf32> to vector<16xf32>
    %50 = vector.shape_cast %49 : vector<16xf32> to vector<16x1xf32>
    %51 = tpu.reciprocal %50 {approx = true} : vector<16x1xf32> -> vector<16x1xf32>
    %52 = vector.broadcast %51 : vector<16x1xf32> to vector<16x16xf32>
    %53 = arith.mulf %48, %52 : vector<16x16xf32>
    %cst_25 = arith.constant dense<0.000000e+00> : vector<16x64xf32>
    %54 = tpu.matmul %53, %40, %cst_25 {dimension_numbers = #tpu.dot_dimension_numbers<[1], [0], [0], [1], [0, 0, 1, 1], [], []>} : vector<16x16xf32>, vector<16x64xf32>, vector<16x64xf32> -> vector<16x64xf32>
    %55 = vector.extract_strided_slice %14 {offsets = [64, 0], sizes = [64, 128], strides = [1, 1]} : vector<128x128xf32> to vector<64x128xf32>
    %cst_26 = arith.constant dense<0.000000e+00> : vector<16x128xf32>
    %56 = tpu.matmul %54, %55, %cst_26 {dimension_numbers = #tpu.dot_dimension_numbers<[1], [0], [0], [1], [0, 0, 1, 1], [], []>} : vector<16x64xf32>, vector<64x128xf32>, vector<16x128xf32> -> vector<16x128xf32>
    %57 = arith.addf %37, %56 : vector<16x128xf32>
    %58 = arith.addf %57, %3 : vector<16x128xf32>
    %c0_27 = arith.constant 0 : index
    %c0_28 = arith.constant 0 : index
    %c0_29 = arith.constant 0 : index
    %59 = vector.load %arg10[%c0_27, %c0_28, %c0_29] : memref<1x1x128xf32, #tpu.memory_space<vmem>>, vector<1x1x128xf32>
    %60 = vector.shape_cast %59 : vector<1x1x128xf32> to vector<1x128xf32>
    %c0_30 = arith.constant 0 : index
    %c0_31 = arith.constant 0 : index
    %c0_32 = arith.constant 0 : index
    %61 = vector.load %arg11[%c0_30, %c0_31, %c0_32] : memref<1x1x128xf32, #tpu.memory_space<vmem>>, vector<1x1x128xf32>
    %62 = vector.shape_cast %61 : vector<1x1x128xf32> to vector<1x128xf32>
    %cst_33 = arith.constant dense<0.000000e+00> : vector<16xf32>
    %63 = vector.multi_reduction <add>, %58, %cst_33 [1] : vector<16x128xf32> to vector<16xf32>
    %64 = vector.shape_cast %63 : vector<16xf32> to vector<16x1xf32>
    %cst_34 = arith.constant 1.280000e+02 : f32
    %65 = vector.broadcast %cst_34 : f32 to vector<16x1xf32>
    %66 = arith.divf %64, %65 : vector<16x1xf32>
    %67 = vector.broadcast %66 : vector<16x1xf32> to vector<16x128xf32>
    %68 = arith.subf %58, %67 : vector<16x128xf32>
    %69 = arith.mulf %68, %68 : vector<16x128xf32>
    %cst_35 = arith.constant dense<0.000000e+00> : vector<16xf32>
    %70 = vector.multi_reduction <add>, %69, %cst_35 [1] : vector<16x128xf32> to vector<16xf32>
    %71 = vector.shape_cast %70 : vector<16xf32> to vector<16x1xf32>
    %cst_36 = arith.constant 1.280000e+02 : f32
    %72 = vector.broadcast %cst_36 : f32 to vector<16x1xf32>
    %73 = arith.divf %71, %72 : vector<16x1xf32>
    %cst_37 = arith.constant 9.99999996E-13 : f32
    %74 = vector.broadcast %cst_37 : f32 to vector<16x1xf32>
    %75 = arith.addf %73, %74 : vector<16x1xf32>
    %76 = math.rsqrt %75 : vector<16x1xf32>
    %77 = vector.broadcast %76 : vector<16x1xf32> to vector<16x128xf32>
    %78 = arith.mulf %68, %77 : vector<16x128xf32>
    %79 = vector.broadcast %60 : vector<1x128xf32> to vector<16x128xf32>
    %80 = arith.mulf %78, %79 : vector<16x128xf32>
    %81 = vector.broadcast %62 : vector<1x128xf32> to vector<16x128xf32>
    %82 = arith.addf %80, %81 : vector<16x128xf32>
    %c0_38 = arith.constant 0 : index
    %c0_39 = arith.constant 0 : index
    %c0_40 = arith.constant 0 : index
    %83 = vector.load %arg12[%c0_38, %c0_39, %c0_40] : memref<1x128x256xf32, #tpu.memory_space<vmem>>, vector<1x128x256xf32>
    %84 = vector.shape_cast %83 : vector<1x128x256xf32> to vector<128x256xf32>
    %cst_41 = arith.constant dense<0.000000e+00> : vector<16x256xf32>
    %85 = tpu.matmul %82, %84, %cst_41 {dimension_numbers = #tpu.dot_dimension_numbers<[1], [0], [0], [1], [0, 0, 1, 1], [], []>} : vector<16x128xf32>, vector<128x256xf32>, vector<16x256xf32> -> vector<16x256xf32>
    %c0_42 = arith.constant 0 : index
    %c0_43 = arith.constant 0 : index
    %c0_44 = arith.constant 0 : index
    %86 = vector.load %arg13[%c0_42, %c0_43, %c0_44] : memref<1x1x256xf32, #tpu.memory_space<vmem>>, vector<1x1x256xf32>
    %87 = vector.shape_cast %86 : vector<1x1x256xf32> to vector<1x256xf32>
    %88 = vector.broadcast %87 : vector<1x256xf32> to vector<16x256xf32>
    %89 = arith.addf %85, %88 : vector<16x256xf32>
    %cst_45 = arith.constant 5.000000e-01 : f32
    %90 = vector.broadcast %cst_45 : f32 to vector<16x256xf32>
    %91 = arith.mulf %90, %89 : vector<16x256xf32>
    %cst_46 = arith.constant 4.471500e-02 : f32
    %92 = vector.broadcast %cst_46 : f32 to vector<16x256xf32>
    %93 = arith.mulf %92, %89 : vector<16x256xf32>
    %94 = arith.mulf %93, %89 : vector<16x256xf32>
    %95 = arith.mulf %94, %89 : vector<16x256xf32>
    %96 = arith.addf %89, %95 : vector<16x256xf32>
    %cst_47 = arith.constant 0.797884583 : f32
    %97 = vector.broadcast %cst_47 : f32 to vector<16x256xf32>
    %98 = arith.mulf %97, %96 : vector<16x256xf32>
    %99 = math.tanh %98 : vector<16x256xf32>
    %cst_48 = arith.constant 1.000000e+00 : f32
    %100 = vector.broadcast %cst_48 : f32 to vector<16x256xf32>
    %101 = arith.addf %100, %99 : vector<16x256xf32>
    %102 = arith.mulf %91, %101 : vector<16x256xf32>
    %c0_49 = arith.constant 0 : index
    %c0_50 = arith.constant 0 : index
    %c0_51 = arith.constant 0 : index
    %103 = vector.load %arg14[%c0_49, %c0_50, %c0_51] : memref<1x256x128xf32, #tpu.memory_space<vmem>>, vector<1x256x128xf32>
    %104 = vector.shape_cast %103 : vector<1x256x128xf32> to vector<256x128xf32>
    %cst_52 = arith.constant dense<0.000000e+00> : vector<16x128xf32>
    %105 = tpu.matmul %102, %104, %cst_52 {dimension_numbers = #tpu.dot_dimension_numbers<[1], [0], [0], [1], [0, 0, 1, 1], [], []>} : vector<16x256xf32>, vector<256x128xf32>, vector<16x128xf32> -> vector<16x128xf32>
    %c0_53 = arith.constant 0 : index
    %c0_54 = arith.constant 0 : index
    %c0_55 = arith.constant 0 : index
    %106 = vector.load %arg15[%c0_53, %c0_54, %c0_55] : memref<1x1x128xf32, #tpu.memory_space<vmem>>, vector<1x1x128xf32>
    %107 = vector.shape_cast %106 : vector<1x1x128xf32> to vector<1x128xf32>
    %108 = vector.broadcast %107 : vector<1x128xf32> to vector<16x128xf32>
    %109 = arith.addf %105, %108 : vector<16x128xf32>
    %110 = arith.addf %109, %82 : vector<16x128xf32>
    %c0_56 = arith.constant 0 : index
    %c0_57 = arith.constant 0 : index
    %c0_58 = arith.constant 0 : index
    %111 = vector.load %arg16[%c0_56, %c0_57, %c0_58] : memref<1x1x128xf32, #tpu.memory_space<vmem>>, vector<1x1x128xf32>
    %112 = vector.shape_cast %111 : vector<1x1x128xf32> to vector<1x128xf32>
    %c0_59 = arith.constant 0 : index
    %c0_60 = arith.constant 0 : index
    %c0_61 = arith.constant 0 : index
    %113 = vector.load %arg17[%c0_59, %c0_60, %c0_61] : memref<1x1x128xf32, #tpu.memory_space<vmem>>, vector<1x1x128xf32>
    %114 = vector.shape_cast %113 : vector<1x1x128xf32> to vector<1x128xf32>
    %cst_62 = arith.constant dense<0.000000e+00> : vector<16xf32>
    %115 = vector.multi_reduction <add>, %110, %cst_62 [1] : vector<16x128xf32> to vector<16xf32>
    %116 = vector.shape_cast %115 : vector<16xf32> to vector<16x1xf32>
    %cst_63 = arith.constant 1.280000e+02 : f32
    %117 = vector.broadcast %cst_63 : f32 to vector<16x1xf32>
    %118 = arith.divf %116, %117 : vector<16x1xf32>
    %119 = vector.broadcast %118 : vector<16x1xf32> to vector<16x128xf32>
    %120 = arith.subf %110, %119 : vector<16x128xf32>
    %121 = arith.mulf %120, %120 : vector<16x128xf32>
    %cst_64 = arith.constant dense<0.000000e+00> : vector<16xf32>
    %122 = vector.multi_reduction <add>, %121, %cst_64 [1] : vector<16x128xf32> to vector<16xf32>
    %123 = vector.shape_cast %122 : vector<16xf32> to vector<16x1xf32>
    %cst_65 = arith.constant 1.280000e+02 : f32
    %124 = vector.broadcast %cst_65 : f32 to vector<16x1xf32>
    %125 = arith.divf %123, %124 : vector<16x1xf32>
    %cst_66 = arith.constant 9.99999996E-13 : f32
    %126 = vector.broadcast %cst_66 : f32 to vector<16x1xf32>
    %127 = arith.addf %125, %126 : vector<16x1xf32>
    %128 = math.rsqrt %127 : vector<16x1xf32>
    %129 = vector.broadcast %128 : vector<16x1xf32> to vector<16x128xf32>
    %130 = arith.mulf %120, %129 : vector<16x128xf32>
    %131 = vector.broadcast %112 : vector<1x128xf32> to vector<16x128xf32>
    %132 = arith.mulf %130, %131 : vector<16x128xf32>
    %133 = vector.broadcast %114 : vector<1x128xf32> to vector<16x128xf32>
    %134 = arith.addf %132, %133 : vector<16x128xf32>
    %c0_67 = arith.constant 0 : index
    %c0_68 = arith.constant 0 : index
    %135 = vector.load %arg19[%c0_67, %c0_68] : memref<16x128xf32, #tpu.memory_space<vmem>>, vector<16x128xf32>
    tpu.vector_store %arg19[%c0_67, %c0_68], %134 {strides = array<i32>} : memref<16x128xf32, #tpu.memory_space<vmem>>, vector<16x128xf32>,
    %c1_i32 = arith.constant 1 : i32
    %136 = arith.cmpi eq, %arg1, %c1_i32 : i32
    %137 = arith.extui %136 : i1 to i32
    %c0_i32_69 = arith.constant 0 : i32
    %138 = arith.cmpi ne, %137, %c0_i32_69 : i32
    scf.if %138 {
      %c0_70 = arith.constant 0 : index
      %c0_71 = arith.constant 0 : index
      %c0_72 = arith.constant 0 : index
      %139 = vector.load %arg18[%c0_70, %c0_71, %c0_72] : memref<1x16x128xf32, #tpu.memory_space<vmem>>, vector<1x16x128xf32>
      %140 = vector.shape_cast %139 : vector<1x16x128xf32> to vector<16x128xf32>
      %141 = vector.shape_cast %134 : vector<16x128xf32> to vector<1x16x128xf32>
      tpu.vector_store %arg18[%c0_70, %c0_71, %c0_72], %141 {strides = array<i32>} : memref<1x16x128xf32, #tpu.memory_space<vmem>>, vector<1x16x128xf32>,
    } else {
    }
    return
  }
  func.func @transform_0(%arg0: i32, %arg1: i32) -> (i32, i32, i32) {
    %c0_i32 = arith.constant 0 : i32
    %c0_i32_0 = arith.constant 0 : i32
    %c0_i32_1 = arith.constant 0 : i32
    return %arg0, %c0_i32, %c0_i32_0 : i32, i32, i32
  }
  func.func @transform_1(%arg0: i32, %arg1: i32) -> (i32, i32, i32) {
    %c0_i32 = arith.constant 0 : i32
    %c0_i32_0 = arith.constant 0 : i32
    %c0_i32_1 = arith.constant 0 : i32
    return %arg0, %c0_i32, %c0_i32_0 : i32, i32, i32
  }
  func.func @transform_2(%arg0: i32, %arg1: i32) -> (i32, i32) {
    %c0_i32 = arith.constant 0 : i32
    %c0_i32_0 = arith.constant 0 : i32
    %c0_i32_1 = arith.constant 0 : i32
    return %c0_i32, %c0_i32_0 : i32, i32
  }
  func.func @transform_3(%arg0: i32, %arg1: i32) -> (i32, i32) {
    %c0_i32 = arith.constant 0 : i32
    %c0_i32_0 = arith.constant 0 : i32
    %c0_i32_1 = arith.constant 0 : i32
    return %c0_i32, %c0_i32_0 : i32, i32
  }
  func.func @transform_4(%arg0: i32, %arg1: i32) -> (i32, i32, i32) {
    %c0_i32 = arith.constant 0 : i32
    %c0_i32_0 = arith.constant 0 : i32
    %c0_i32_1 = arith.constant 0 : i32
    return %arg1, %c0_i32, %c0_i32_0 : i32, i32, i32
  }
  func.func @transform_5(%arg0: i32, %arg1: i32) -> (i32, i32, i32) {
    %c0_i32 = arith.constant 0 : i32
    %c0_i32_0 = arith.constant 0 : i32
    %c0_i32_1 = arith.constant 0 : i32
    return %arg1, %c0_i32, %c0_i32_0 : i32, i32, i32
  }
  func.func @transform_6(%arg0: i32, %arg1: i32) -> (i32, i32, i32) {
    %c0_i32 = arith.constant 0 : i32
    %c0_i32_0 = arith.constant 0 : i32
    %c0_i32_1 = arith.constant 0 : i32
    return %arg1, %c0_i32, %c0_i32_0 : i32, i32, i32
  }
  func.func @transform_7(%arg0: i32, %arg1: i32) -> (i32, i32, i32) {
    %c0_i32 = arith.constant 0 : i32
    %c0_i32_0 = arith.constant 0 : i32
    %c0_i32_1 = arith.constant 0 : i32
    return %arg1, %c0_i32, %c0_i32_0 : i32, i32, i32
  }
  func.func @transform_8(%arg0: i32, %arg1: i32) -> (i32, i32, i32) {
    %c0_i32 = arith.constant 0 : i32
    %c0_i32_0 = arith.constant 0 : i32
    %c0_i32_1 = arith.constant 0 : i32
    return %arg1, %c0_i32, %c0_i32_0 : i32, i32, i32
  }
  func.func @transform_9(%arg0: i32, %arg1: i32) -> (i32, i32, i32) {
    %c0_i32 = arith.constant 0 : i32
    %c0_i32_0 = arith.constant 0 : i32
    %c0_i32_1 = arith.constant 0 : i32
    return %arg1, %c0_i32, %c0_i32_0 : i32, i32, i32
  }
  func.func @transform_10(%arg0: i32, %arg1: i32) -> (i32, i32, i32) {
    %c0_i32 = arith.constant 0 : i32
    %c0_i32_0 = arith.constant 0 : i32
    %c0_i32_1 = arith.constant 0 : i32
    return %arg1, %c0_i32, %c0_i32_0 : i32, i32, i32
  }
  func.func @transform_11(%arg0: i32, %arg1: i32) -> (i32, i32, i32) {
    %c0_i32 = arith.constant 0 : i32
    %c0_i32_0 = arith.constant 0 : i32
    %c0_i32_1 = arith.constant 0 : i32
    return %arg1, %c0_i32, %c0_i32_0 : i32, i32, i32
  }
  func.func @transform_12(%arg0: i32, %arg1: i32) -> (i32, i32, i32) {
    %c0_i32 = arith.constant 0 : i32
    %c0_i32_0 = arith.constant 0 : i32
    %c0_i32_1 = arith.constant 0 : i32
    return %arg1, %c0_i32, %c0_i32_0 : i32, i32, i32
  }
  func.func @transform_13(%arg0: i32, %arg1: i32) -> (i32, i32, i32) {
    %c0_i32 = arith.constant 0 : i32
    %c0_i32_0 = arith.constant 0 : i32
    %c0_i32_1 = arith.constant 0 : i32
    return %arg1, %c0_i32, %c0_i32_0 : i32, i32, i32
  }
  func.func @transform_14(%arg0: i32, %arg1: i32) -> (i32, i32, i32) {
    %c0_i32 = arith.constant 0 : i32
    %c0_i32_0 = arith.constant 0 : i32
    %c0_i32_1 = arith.constant 0 : i32
    return %arg1, %c0_i32, %c0_i32_0 : i32, i32, i32
  }
  func.func @transform_15(%arg0: i32, %arg1: i32) -> (i32, i32, i32) {
    %c0_i32 = arith.constant 0 : i32
    %c0_i32_0 = arith.constant 0 : i32
    %c0_i32_1 = arith.constant 0 : i32
    return %arg1, %c0_i32, %c0_i32_0 : i32, i32, i32
  }
  func.func @transform_16(%arg0: i32, %arg1: i32) -> (i32, i32, i32) {
    %c0_i32 = arith.constant 0 : i32
    %c0_i32_0 = arith.constant 0 : i32
    %c0_i32_1 = arith.constant 0 : i32
    return %arg0, %c0_i32, %c0_i32_0 : i32, i32, i32
  }
}

</mosaic_0001>

<bundles_post_ra>
// kernel: long_answer_encoder.1
= control target key start
LH: loop header
LB: loop body
LE: loop exit
PB: predicated region body
PF: predicated region fallthrough
CT: control target
= control target key end

     0   :  { %s3201_s0 = inlined_call_operand.vmem [shape: f32[2,16,128], index: 0, kind: input, shape index: {}]   ;;  %s3202_s1 = inlined_call_operand.vmem [shape: f32[2,1,16], index: 1, kind: input, shape index: {}]   ;;  %s3203_s2 = inlined_call_operand.vmem [shape: f32[1,128], index: 2, kind: input, shape index: {}]   ;;  %s3204_s3 = inlined_call_operand.vmem [shape: f32[1,128], index: 3, kind: input, shape index: {}]   ;;  %s3205_s4 = inlined_call_operand.vmem [shape: f32[2,128,384], index: 4, kind: input, shape index: {}]   ;;  %s3206_s5 = inlined_call_operand.vmem [shape: f32[2,1,384], index: 5, kind: input, shape index: {}]   ;;  %s3207_s6 = inlined_call_operand.vmem [shape: f32[2,128,128], index: 6, kind: input, shape index: {}]   ;;  %s3208_s7 = inlined_call_operand.vmem [shape: f32[2,1,128], index: 7, kind: input, shape index: {}]   ;;  %s3209_s8 = inlined_call_operand.vmem [shape: f32[2,1,128], index: 8, kind: input, shape index: {}]   ;;  %s3210_s9 = inlined_call_operand.vmem [shape: f32[2,1,128], index: 9, kind: input, shape index: {}]   ;;  %s3211_s10 = inlined_call_operand.vmem [shape: f32[2,128,256], index: 10, kind: input, shape index: {}]   ;;  %s3212_s11 = inlined_call_operand.vmem [shape: f32[2,1,256], index: 11, kind: input, shape index: {}]   ;;  %s3213_s12 = inlined_call_operand.vmem [shape: f32[2,256,128], index: 12, kind: input, shape index: {}]   ;;  %s3214_s13 = inlined_call_operand.vmem [shape: f32[2,1,128], index: 13, kind: input, shape index: {}]   ;;  %s3215_s14 = inlined_call_operand.vmem [shape: f32[2,1,128], index: 14, kind: input, shape index: {}]   ;;  %s3216_s15 = inlined_call_operand.vmem [shape: f32[2,1,128], index: 15, kind: input, shape index: {}]   ;;  %s3217_s16 = inlined_call_operand.hbm [shape: f32[2,16,128], index: 16, kind: output, shape index: {}]  }
   0x1   :  { %3234 = sst [smem:[#allocation20_spill]] %s3201_s0 }
   0x2   :  { %3235 = sst [smem:[#allocation21_spill]] %s3202_s1 }
   0x3   :  { %3236 = sst [smem:[#allocation22_spill]] %s3203_s2 }
   0x4   :  { %3237 = sst [smem:[#allocation23_spill]] %s3204_s3 }
   0x5   :  { %3238 = sst [smem:[#allocation24_spill]] %s3205_s4 }
   0x6   :  { %3239 = sst [smem:[#allocation25_spill]] %s3206_s5 }
   0x7   :  { %3240 = sst [smem:[#allocation26_spill]] %s3207_s6 }
   0x8   :  { %3241 = sst [smem:[#allocation27_spill]] %s3210_s9 }
   0x9   :  { %3242 = sst [smem:[#allocation28_spill]] %s3211_s10 }
   0xa   :  { %3243 = sst [smem:[#allocation29_spill]] %s3216_s15 }
   0xb   :  { %3244 = sst [smem:[#allocation30_spill]] %s3217_s16 }
   0xc   :  { %21 = vsyncpa [#allocation4], 0 }
   0xd   :  { %23 = vsyncpa [#allocation4 + $0x1], 0  ;;  %s2731_s21 = smov 0   ;;  %s2733_s22 = smov 0  }
   0xe   :  { %s2735_s23 = smov 0   ;;  %s2737_s24 = smov 0  }
   0xf   :  { %s2739_s25 = smov 0   ;;  %s2741_s26 = smov 0  }
  0x10   :  { %s2743_s27 = smov 0   ;;  %s2745_s28 = smov 0  }
  0x11 LB: > { %3245 = sst [smem:[#allocation6_spill]] %s2611_s21  ;;  %s2188_s29 = sadd.s32 4294967295, %s2639_s28   ;;  %s2639_s28 = sphi %s2745_s28, %s29_s28   ;;  %s2635_s27 = sphi %s2743_s27, %s3296_s27   ;;  %s2631_s26 = sphi %s2741_s26, %s3295_s26   ;;  %s2627_s25 = sphi %s2739_s25, %s3294_s25   ;;  %s2623_s24 = sphi %s2737_s24, %s3293_s24   ;;  %s2619_s23 = sphi %s2735_s23, %s3292_s23   ;;  %s2615_s22 = sphi %s2733_s22, %s3291_s22   ;;  %s2611_s21 = sphi %s2731_s21, %s3290_s21  }
  0x12   : > { %3246 = sst [smem:[#allocation7_spill]] %s2615_s22  ;;  %s2189_s30 = sadd.s32 4294967294, %s2639_s28  }
  0x13   : > { %3247 = sst [smem:[#allocation8_spill]] %s2619_s23  ;;  %s38_s0 = sadd.s32 1, %s2631_s26 }
  0x14   : > { %3248 = sst [smem:[#allocation9_spill]] %s2623_s24  ;;  %p39_p0 = scmp.ge.s32.totalorder %s38_s0, 2 }
  0x15   : > { %3249 = sst [smem:[#allocation10_spill]] %s2627_s25  ;;  %s41_s17 = sadd.s32 1, %s2635_s27 }
  0x16   : > { %3250 = sst [smem:[#allocation11_spill]] %s2631_s26  ;;  %p464_p1 = scmp.ne.s32.totalorder %s2619_s23, %s2615_s22 }
  0x17   : > { %3251 = sst [smem:[#allocation12_spill]] %s2635_s27  ;;  %p465_p2 = scmp.eq.s32.totalorder %s2188_s29, 3 }
  0x18   : > { %3252 = sst [smem:[#allocation13_spill]] %s2639_s28  ;;  %s3298_s0 = smov (%p39_p0, %s38_s0), 0 }
  0x19   : > { %3253 = sst [smem:[#allocation14_spill]] %s3298_s0  ;;  %s3300_s17 = smov (!%p39_p0, %s41_s17), %s2635_s27 }
  0x1a   : > { %p2780_p3 = por %p465_p2, %p464_p1  ;;  %p470_p4 = scmp.ne.s32.totalorder %s2615_s22, %s2611_s21 }
  0x1b   : > { %p43_p5 = scmp.ge.s32.totalorder %s3300_s17, 2  ;;  %p471_p6 = scmp.eq.s32.totalorder %s2189_s30, 3 }
  0x1c   : > { %s3254_s18 = scalar_select %p2780_p3, 1, 0 }
  0x1d   : > { %p2192_p7 = scmp.ge.s32.totalorder %s2639_s28, 1  ;;  %p591_p8 = scmp.lt.s32.totalorder %s2639_s28, 5 }
  0x1e   : > { %3255 = sst [smem:[#allocation15_spill]] %s3254_s18  ;;  %s3302_s17 = smov (%p43_p5, %s3300_s17), 0 }
  0x1f   : > { %3256 = sst [smem:[#allocation16_spill]] %s3302_s17  ;;  %p2790_p9 = por %p471_p6, %p470_p4 }
  0x20   : > { %p592_p10 = pnand %p2192_p7, %p591_p8  ;;  %s451_s20 = ssub.s32 %s2635_s27, %s3302_s17 }
  0x21   : > { %s3257_s19 = scalar_select %p2790_p9, 1, 0 }
  0x22   : > { %s454_s29 = sadd.s32 1, %s2619_s23  ;;  %p452_p11 = scmp.eq.s32.totalorder %s451_s20, 0 }
  0x23   : > { %3258 = sst [smem:[#allocation17_spill]] %s3257_s19  ;;  %595 = sbr.rel (%p592_p10) target bundleno = 2719 (0xa9f), region = 84 }
  0x24   : > { %s2798_s0 = scalar_select %p452_p11, %s2619_s23, %s454_s29  }
  0x26   : > { %3259 = sst [smem:[#allocation18_spill]] %s2798_s0 }
  0x28   : > { %s3222_s30 = sand.u32 1, %s2615_s22   ;;  %p690_p12 = scmp.lt.s32.totalorder %s2627_s25, 1 }
  0x29   : > { %s2193_s26 = sshll.u32 %s3222_s30, 4  ;;  %p698_p13 = scmp.lt.s32.totalorder %s2623_s24, 1 }
  0x2a   : > { %s2806_s21 = scalar_select %p690_p12, %s2627_s25, 1 }
  0x2b   : > { %s2809_s17 = scalar_select %p698_p13, %s2623_s24, 1 }
  0x2c   : > { %3260 = sst [smem:[#allocation19_spill]] %s2806_s21  ;;  %s2236_s20 = sshll.u32 %s2806_s21, 4 }
  0x2d   : > { %s3262_s19 = sld [smem:[#allocation20_spill]]  ;;  %s2434_s16 = smul.u32 384, %s2809_s17 }
  0x2e   : > { %s2435_s18 = smul.u32 3, %s2809_s17  ;;  %s2237_s22 = sshll.u32 %s2809_s17, 7 }
  0x2f   : > { %s3263_s4 = sld [smem:[#allocation24_spill]]  ;;  %s2238_s15 = sshll.u32 %s2809_s17, 8 }
  0x30   : > { %s3264_s6 = sld [smem:[#allocation26_spill]]  ;;  %s2864_s1 = scalar_lea.vmem %s3213_s12, %s2238_s15 }
  0x31   : > { %s3265_s5 = sld [smem:[#allocation25_spill]]  ;;  %s737_s25 = scalar_lea.vmem %s3214_s13, %s2809_s17 }
  0x32   : > { %s3267_s10 = sld [smem:[#allocation28_spill]] }
  0x33   : > { %s694_s28 = scalar_lea.vmem %s3262_s19, %s2236_s20 }
  0x35   : > { %s2825_s2 = scalar_lea.vmem %s3263_s4, %s2434_s16 }
  0x36   : > { %s2830_s27 = scalar_lea.vmem %s3264_s6, %s2237_s22  ;;  %s2201_s22 = sshll.u32 %s2809_s17, 1 }
  0x37   : > { %s2835_s23 = scalar_lea.vmem %s3265_s5, %s2435_s18  ;;  %s2859_s0 = scalar_lea.vmem %s3212_s11, %s2201_s22 }
  0x38   : > { %s2854_s30 = scalar_lea.vmem %s3267_s10, %s2238_s15  ;;  %s740_s6 = scalar_lea.vmem %s3215_s14, %s2809_s17 }
  0x39   : > { %s3268_s10 = sld [smem:[#allocation29_spill]]  ;;  %s2878_s18 = scalar_lea.vmem [#allocation3], %s2193_s26 }
  0x3a   : > { %s3269_s22 = sld [smem:[#allocation9_spill]] }
  0x3f   : > { %s743_s9 = scalar_lea.vmem %s3268_s10, %s2809_s17 }
  0x40   : > { %p2204_p0 = scmp.ne.s32.totalorder %s3269_s22, 0 }
  0x41   : > { %s3270_s10 = sld [smem:[#allocation22_spill]] (!%p2204_p0) }
  0x42   : > { %747 = sbr.rel (%p2204_p0) target bundleno = 383 (0x17f), region = 88  ;;  %s3271_s20 = sld [smem:[#allocation23_spill]] (!%p2204_p0) }
  0x47   : > { %v748_v0 = vld [vmem:[%s694_s28] sm:$0xff]  ;;  %v749_v1 = vld [vmem:[%s694_s28 + $0x8] sm:$0xff] }
  0x48   : > { %752 = vadd.xlane.f32.xlu0 %v748_v0  ;;  %v2205_v17 = vld [vmem:[%s3270_s10] ss:$0 sm:$0xff] }
  0x49   : > { %v2206_v19 = vld [vmem:[%s3271_s20] ss:$0 sm:$0xff] }
  0x4c   : > { %754 = vadd.xlane.f32.xlu0 %v749_v1 }
  0xd1   : > { %v753_v2 = vpop.xlane.xlu0 %752 }
  0xd2   : > { %v757_v3 = vmul.f32 0.0078125, %v753_v2 }
  0xd4   : > { %v759_v4 = vsub.f32 %v748_v0, %v757_v3 }
  0xd5   : > { %v755_v5 = vpop.xlane.xlu0 %754 }
  0xd6   : > { %v758_v6 = vmul.f32 0.0078125, %v755_v5  ;;  %v761_v7 = vmul.f32 %v759_v4, %v759_v4 }
  0xd8   : > { %v760_v8 = vsub.f32 %v749_v1, %v758_v6  ;;  %763 = vadd.xlane.f32.xlu1 %v761_v7 }
  0xda   : > { %v762_v9 = vmul.f32 %v760_v8, %v760_v8 }
  0xdc   : > { %765 = vadd.xlane.f32.xlu1 %v762_v9 }
 0x161   : > { %v764_v10 = vpop.xlane.xlu1 %763 }
 0x162   : > { %v767_v11 = vmul.f32 0.0078125, %v764_v10 }
 0x164   : > { %v769_v12 = vadd.f32 1e-12, %v767_v11 }
 0x165   : > { %v766_v13 = vpop.xlane.xlu1 %765 }
 0x166   : > { %2511 = vrsqrt.f32 %v769_v12  ;;  %v768_v14 = vmul.f32 0.0078125, %v766_v13 }
 0x168   : > { %v770_v15 = vadd.f32 1e-12, %v768_v14 }
 0x16a   : > { %2513 = vrsqrt.f32 %v770_v15 }
 0x173   : > { %v2512_v16 = vpop.eup %2511 }
 0x174   : > { %v773_v18 = vmul.f32 %v2512_v16, %v759_v4 }
 0x176   : > { %v781_v20 = vmul.f32 %v2205_v17, %v773_v18 }
 0x177   : > { %v2514_v21 = vpop.eup %2513 }
 0x178   : > { %v789_v22 = vadd.f32 %v2206_v19, %v781_v20  ;;  %v774_v23 = vmul.f32 %v2514_v21, %v760_v8 }
 0x17a   : > { %791 = vst [vmem:[#allocation2] sm:$0xff] %v789_v22  ;;  %v782_v24 = vmul.f32 %v2205_v17, %v774_v23 }
 0x17c   : > { %v790_v25 = vadd.f32 %v2206_v19, %v782_v24 }
 0x17e   : > { %792 = vst [vmem:[#allocation2 + $0x8] sm:$0xff] %v790_v25 }
 0x17f PF: > { %v842_v26 = vld [vmem:[%s2825_s2 + $0x170] sm:$0xff]  ;;  %v841_v27 = vld [vmem:[%s2825_s2 + $0x168] sm:$0xff]  ;;  %v839_v28 = vld [vmem:[%s2825_s2 + $0x158] sm:$0xff]  ;;  %v2641_v30 = vmov 0.0   ;;  %v846_v13 = vlaneseq  ;;  %vm1036_vm0 = vcmask 523264   ;;  %s3273_s29 = sld [smem:[#allocation21_spill]]  ;;  %s3275_s16 = scalar_lea.vmem %s3208_s7, %s2809_s17 }
 0x180   : > { %861 = vmatprep.subr.mxu0 %v842_v26  ;;  %v838_v29 = vld [vmem:[%s2825_s2 + $0x150] sm:$0xff]  ;;  %925 = vmatprep.mubr.f32.mxu0 %v2641_v30  ;;  %v836_v31 = vld [vmem:[%s2825_s2 + $0x140] sm:$0xff]  ;;  %v835_v32 = vld [vmem:[%s2825_s2 + $0x138] sm:$0xff]  ;;  %vm1124_vm1 = vcmask 130048   ;;  %s3276_s22 = scalar_lea.vmem %s3209_s8, %s2809_s17  ;;  %s3277_s10 = sld [smem:[#allocation27_spill]] }
 0x181   : > { %862 = vmatpush1.msra.mxu0 %v841_v27  ;;  %v833_v33 = vld [vmem:[%s2825_s2 + $0x128] sm:$0xff]  ;;  %v832_v34 = vld [vmem:[%s2825_s2 + $0x120] sm:$0xff]  ;;  %v830_v35 = vld [vmem:[%s2825_s2 + $0x110] sm:$0xff]  ;;  %v2945_v14 = vshrl.u32 %v846_v13, 7  ;;  %s3280_s3 = sld [smem:[#allocation9_spill]] }
 0x182   : > { %863 = vmatprep.subr.mxu0 %v839_v28  ;;  %v829_v36 = vld [vmem:[%s2825_s2 + $0x108] sm:$0xff]  ;;  %v827_v37 = vld [vmem:[%s2825_s2 + $0xf8] sm:$0xff]  ;;  %v826_v38 = vld [vmem:[%s2825_s2 + $0xf0] sm:$0xff] }
 0x183   : > { %864 = vmatpush1.msra.mxu0 %v838_v29  ;;  %v824_v39 = vld [vmem:[%s2825_s2 + $0xe0] sm:$0xff]  ;;  %v823_v41 = vld [vmem:[%s2825_s2 + $0xd8] sm:$0xff]  ;;  %v821_v44 = vld [vmem:[%s2825_s2 + $0xc8] sm:$0xff]  ;;  %v848_v15 = vsub.s32 0, %v2945_v14  ;;  %v852_v20 = vsub.s32 1, %v2945_v14  ;;  %v856_v28 = vsub.s32 2, %v2945_v14 }
 0x184   : > { %865 = vmatprep.subr.mxu0 %v836_v31  ;;  %v2901_v40 = vld [vmem:[#allocation2] sm:$0xff]  ;;  %v843_v42 = vld [vmem:[%s2825_s2 + $0x178] sm:$0xff]  ;;  %v837_v46 = vld [vmem:[%s2825_s2 + $0x148] sm:$0xff] }
 0x185   : > { %866 = vmatpush1.msra.mxu0 %v835_v32  ;;  %v840_v43 = vld [vmem:[%s2825_s2 + $0x160] sm:$0xff]  ;;  %2365 = vmatprep.mubr.f32.mxu1 %v2901_v40  ;;  %v818_v47 = vld [vmem:[%s2825_s2 + $0xb0] sm:$0xff]  ;;  %v817_v48 = vld [vmem:[%s2825_s2 + $0xa8] sm:$0xff] }
 0x186   : > { %867 = vmatprep.subr.mxu0 %v833_v33  ;;  %2333 = vmatprep.subr.mxu1 %v843_v42  ;;  %v820_v45 = vld [vmem:[%s2825_s2 + $0xc0] sm:$0xff]  ;;  %v834_v49 = vld [vmem:[%s2825_s2 + $0x130] sm:$0xff]  ;;  %v815_v50 = vld [vmem:[%s2825_s2 + $0x98] sm:$0xff]  ;;  %s3278_s26 = scalar_lea.vmem %s3277_s10, %s2809_s17 }
 0x187   : > { %868 = vmatpush1.msra.mxu0 %v832_v34  ;;  %2334 = vmatpush3.msra.mxu1 %v843_v42  ;;  %v814_v51 = vld [vmem:[%s2825_s2 + $0x90] sm:$0xff]  ;;  %v831_v52 = vld [vmem:[%s2825_s2 + $0x118] sm:$0xff]  ;;  %v812_v53 = vld [vmem:[%s2825_s2 + $0x80] sm:$0xff]  ;;  %p2230_p1 = scmp.ne.s32.totalorder %s3280_s3, 1 }
 0x188   : > { %869 = vmatprep.subr.mxu0 %v830_v35  ;;  %2335 = vmatprep.subr.mxu1 %v840_v43  ;;  %v811_v54 = vld [vmem:[%s2825_s2 + $0x78] sm:$0xff]  ;;  %v828_v55 = vld [vmem:[%s2825_s2 + $0x100] sm:$0xff]  ;;  %v809_v56 = vld [vmem:[%s2825_s2 + $0x68] sm:$0xff] }
 0x189   : > { %870 = vmatpush1.msra.mxu0 %v829_v36  ;;  %2336 = vmatpush3.msra.mxu1 %v840_v43  ;;  %v808_v57 = vld [vmem:[%s2825_s2 + $0x60] sm:$0xff]  ;;  %v825_v58 = vld [vmem:[%s2825_s2 + $0xe8] sm:$0xff]  ;;  %v806_v59 = vld [vmem:[%s2825_s2 + $0x50] sm:$0xff] }
 0x18a   : > { %871 = vmatprep.subr.mxu0 %v827_v37  ;;  %2337 = vmatprep.subr.mxu1 %v837_v46  ;;  %v805_v60 = vld [vmem:[%s2825_s2 + $0x48] sm:$0xff]  ;;  %v822_v61 = vld [vmem:[%s2825_s2 + $0xd0] sm:$0xff]  ;;  %v803_v62 = vld [vmem:[%s2825_s2 + $0x38] sm:$0xff] }
 0x18b   : > { %872 = vmatpush1.msra.mxu0 %v826_v38  ;;  %2338 = vmatpush3.msra.mxu1 %v837_v46  ;;  %v802_v63 = vld [vmem:[%s2825_s2 + $0x30] sm:$0xff]  ;;  %v819_v0 = vld [vmem:[%s2825_s2 + $0xb8] sm:$0xff]  ;;  %v800_v1 = vld [vmem:[%s2825_s2 + $0x20] sm:$0xff] }
 0x18c   : > { %873 = vmatprep.subr.mxu0 %v824_v39  ;;  %2339 = vmatprep.subr.mxu1 %v834_v49  ;;  %v799_v2 = vld [vmem:[%s2825_s2 + $0x18] sm:$0xff]  ;;  %v816_v3 = vld [vmem:[%s2825_s2 + $0xa0] sm:$0xff]  ;;  %v797_v4 = vld [vmem:[%s2825_s2 + $0x8] sm:$0xff] }
 0x18d   : > { %874 = vmatpush1.msra.mxu0 %v823_v41  ;;  %2340 = vmatpush3.msra.mxu1 %v834_v49  ;;  %v796_v5 = vld [vmem:[%s2825_s2] sm:$0xff]  ;;  %v813_v6 = vld [vmem:[%s2825_s2 + $0x88] sm:$0xff]  ;;  %v810_v7 = vld [vmem:[%s2825_s2 + $0x70] sm:$0xff] }
 0x18e   : > { %875 = vmatprep.subr.mxu0 %v821_v44  ;;  %2341 = vmatprep.subr.mxu1 %v831_v52  ;;  %v807_v8 = vld [vmem:[%s2825_s2 + $0x58] sm:$0xff]  ;;  %v2938_v9 = vld [vmem:[#allocation2 + $0x8] sm:$0xff]  ;;  %v804_v10 = vld [vmem:[%s2825_s2 + $0x40] sm:$0xff] }
 0x18f   : > { %876 = vmatpush1.msra.mxu0 %v820_v45  ;;  %2342 = vmatpush3.msra.mxu1 %v831_v52  ;;  %v801_v11 = vld [vmem:[%s2825_s2 + $0x28] sm:$0xff]  ;;  %v798_v12 = vld [vmem:[%s2825_s2 + $0x10] sm:$0xff]  ;;  %v844_v16 = vld [vmem:[%s2835_s23] sm:$0x7]  ;;  %s2642_s2 = smov 64   ;;  %s3272_s23 = sld [smem:[#allocation19_spill]] }
 0x190   : > { %877 = vmatprep.subr.mxu0 %v818_v47  ;;  %2343 = vmatprep.subr.mxu1 %v828_v55  ;;  %v849_v17 = vrot.slane %v844_v16, %v848_v15  ;;  %v853_v23 = vrot.slane %v844_v16, %v852_v20  ;;  %v857_v29 = vrot.slane %v844_v16, %v856_v28 }
 0x191   : > { %878 = vmatpush1.msra.mxu0 %v817_v48  ;;  %2344 = vmatpush3.msra.mxu1 %v828_v55 }
 0x192   : > { %879 = vmatprep.subr.mxu0 %v815_v50  ;;  %2345 = vmatprep.subr.mxu1 %v825_v58 }
 0x193   : > { %880 = vmatpush1.msra.mxu0 %v814_v51  ;;  %2346 = vmatpush3.msra.mxu1 %v825_v58 }
 0x194   : > { %881 = vmatprep.subr.mxu0 %v812_v53  ;;  %2347 = vmatprep.subr.mxu1 %v822_v61 }
 0x195   : > { %882 = vmatpush1.msra.mxu0 %v811_v54  ;;  %2348 = vmatpush3.msra.mxu1 %v822_v61  ;;  %s3274_s19 = scalar_lea.vmem %s3273_s29, %s3272_s23 }
 0x196   : > { %883 = vmatprep.subr.mxu0 %v809_v56  ;;  %2349 = vmatprep.subr.mxu1 %v819_v0  ;;  %v2207_v39 = vld [vmem:[%s3274_s19] ss:$0 sm:$0xff] }
 0x197   : > { %884 = vmatpush1.msra.mxu0 %v808_v57  ;;  %2350 = vmatpush3.msra.mxu1 %v819_v0 }
 0x198   : > { %885 = vmatprep.subr.mxu0 %v806_v59  ;;  %2351 = vmatprep.subr.mxu1 %v816_v3 }
 0x199   : > { %886 = vmatpush1.msra.mxu0 %v805_v60  ;;  %2352 = vmatpush3.msra.mxu1 %v816_v3 }
 0x19a   : > { %887 = vmatprep.subr.mxu0 %v803_v62  ;;  %2353 = vmatprep.subr.mxu1 %v813_v6 }
 0x19b   : > { %888 = vmatpush1.msra.mxu0 %v802_v63  ;;  %2354 = vmatpush3.msra.mxu1 %v813_v6 }
 0x19c   : > { %889 = vmatprep.subr.mxu0 %v800_v1  ;;  %2355 = vmatprep.subr.mxu1 %v810_v7 }
 0x19d   : > { %890 = vmatpush1.msra.mxu0 %v799_v2  ;;  %2356 = vmatpush3.msra.mxu1 %v810_v7 }
 0x19e   : > { %891 = vmatprep.subr.mxu0 %v797_v4  ;;  %2357 = vmatprep.subr.mxu1 %v807_v8 }
 0x19f   : > { %892 = vmatpush1.msra.mxu0 %v796_v5  ;;  %2358 = vmatpush3.msra.mxu1 %v807_v8 }
 0x1a0   : > { %926 = vmatmul.mubr.f32.vlgmr.msra.gmra.mxu0 %v2901_v40  ;;  %2359 = vmatprep.subr.mxu1 %v804_v10 }
 0x1a1   : > { %931 = vmatprep.mubr.f32.mxu0 %v2641_v30  ;;  %2360 = vmatpush3.msra.mxu1 %v804_v10 }
 0x1a2   : > { %2361 = vmatprep.subr.mxu1 %v801_v11 }
 0x1a3   : > { %2362 = vmatpush3.msra.mxu1 %v801_v11 }
 0x1a4   : > { %932 = vmatmul.mubr.f32.gmra.mxu0 %v2938_v9  ;;  %2363 = vmatprep.subr.mxu1 %v798_v12 }
 0x1a5   : > { %2364 = vmatpush3.msra.mxu1 %v798_v12  ;;  %v1020_v12 = vld [vmem:[%s2830_s27 + $0x38] sm:$0xff] }
 0x1a6   : > { %2366 = vmatmul.mubr.f32.vlgmr.msra.gmra.mxu1 %v2938_v9 }
 0x260   : > { %v927_v18 = vpop.f32.mrf.mxu0 }
 0x261   : > { %v928_v19 = vadd.f32 %v927_v18, %v849_v17 }
 0x262   : > { %v929_v21 = vpop.f32.mrf.mxu0 }
 0x263   : > { %1317 = vrot.lane.b32.xlu1 %v928_v19, %s2642_s2  ;;  %2372 = vmatprep.mubr.msk.f32.mxu1 %vm1036_vm0, %v928_v19  ;;  %v930_v27 = vadd.f32 %v929_v21, %v853_v23  ;;  %v1019_v19 = vld [vmem:[%s2830_s27 + $0x30] sm:$0xff]  ;;  %v1018_v21 = vld [vmem:[%s2830_s27 + $0x28] sm:$0xff] }
 0x264   : > { %v933_v22 = vpop.f32.mrf.mxu0 }
 0x265   : > { %v934_v24 = vadd.f32 %v933_v22, %v849_v17  ;;  %v1017_v22 = vld [vmem:[%s2830_s27 + $0x20] sm:$0xff] }
 0x266   : > { %v935_v25 = vpop.f32.mrf.mxu0  ;;  %v2367_v31 = vpop.f32.mrf.mxu1 }
 0x267   : > { %v936_v26 = vadd.f32 %v935_v25, %v853_v23  ;;  %1319 = vrot.lane.b32.xlu1 %v934_v24, %s2642_s2  ;;  %v1010_v32 = vadd.f32 %v2367_v31, %v857_v29  ;;  %v1016_v23 = vld [vmem:[%s2830_s27 + $0x18] sm:$0xff]  ;;  %v1014_v25 = vld [vmem:[%s2830_s27 + $0x8] sm:$0xff] }
 0x268   : > { %v1004_v33 = vpop.f32.mrf.mxu1 }
 0x269   : > { %1323 = vrot.lane.b32.xlu0 %v936_v26, %s2642_s2  ;;  %2368 = vmatprep.subr.msk.mxu1 %vm1036_vm0, %v936_v26  ;;  %v2965_v34 = vadd.f32 %v1004_v33, %v857_v29 }
 0x26a   : > { %2369 = vmatpush3.xpose.msk.msra.mxu1 %vm1036_vm0, %v936_v26  ;;  %v1013_v26 = vld [vmem:[%s2830_s27] sm:$0xff] }
 0x26b   : > { %2370 = vmatprep.subr.msk.mxu1 %vm1036_vm0, %v930_v27 }
 0x26d   : > { %1321 = vrot.lane.b32.xlu0 %v930_v27, %s2642_s2 }
 0x26e   : > { %2371 = vmatpush3.xpose.msk.msra.mxu1 %vm1036_vm0, %v930_v27 }
 0x26f   : > { %2375 = vmatprep.subr.mxu1 %v1010_v32 }
 0x271   : > { %2373 = vmatmul.mubr.msk.f32.vlgmr.msra.gmra.mxu1 %vm1036_vm0, %v934_v24  ;;  %v1015_v24 = vld [vmem:[%s2830_s27 + $0x10] sm:$0xff] }
 0x272   : > { %2376 = vmatpush3.msra.mxu1 %v1010_v32 }
 0x273   : > { %2377 = vmatprep.subr.mxu1 %v2965_v34 }
 0x274   : > { %2378 = vmatpush3.msra.mxu1 %v2965_v34 }
 0x275   : > { %2382 = vmatprep.subr.mxu1 %v1020_v12 }
 0x2d5   : > { %v1318_v35 = vpop.permute.xlu1 %1317 }
 0x2d6   : > { %2405 = vmatprep.mubr.msk.f32.mxu0 %vm1036_vm0, %v1318_v35 }
 0x2d9   : > { %v1320_v38 = vpop.permute.xlu1 %1319 }
 0x2db   : > { %v1324_v36 = vpop.permute.xlu0 %1323 }
 0x2dc   : > { %2401 = vmatprep.subr.msk.mxu0 %vm1036_vm0, %v1324_v36 }
 0x2dd   : > { %2402 = vmatpush3.xpose.msk.msra.mxu0 %vm1036_vm0, %v1324_v36 }
 0x2df   : > { %v1322_v37 = vpop.permute.xlu0 %1321 }
 0x2e0   : > { %2403 = vmatprep.subr.msk.mxu0 %vm1036_vm0, %v1322_v37 }
 0x2e1   : > { %2404 = vmatpush3.xpose.msk.msra.mxu0 %vm1036_vm0, %v1322_v37  ;;  %v1027_v37 = vld [vmem:[%s2830_s27 + $0x70] sm:$0xff] }
 0x2e4   : > { %2406 = vmatmul.mubr.msk.f32.vlgmr.msra.gmra.mxu0 %vm1036_vm0, %v1320_v38  ;;  %v1026_v38 = vld [vmem:[%s2830_s27 + $0x68] sm:$0xff] }
 0x331   : > { %v2374_v41 = vpop.f32.mrf.mxu1 }
 0x332   : > { %v1121_v42 = vadd.f32 %v2374_v41, %v2207_v39  ;;  %v1024_v41 = vld [vmem:[%s2830_s27 + $0x58] sm:$0xff] }
 0x333   : > { %v1115_v43 = vpop.f32.mrf.mxu1 }
 0x334   : > { %v1116_v44 = vadd.f32 %v2207_v39, %v1115_v43  ;;  %v1128_v45 = vsel %vm1124_vm1, %v1121_v42, -inf  ;;  %v1022_v43 = vld [vmem:[%s2830_s27 + $0x48] sm:$0xff] }
 0x335   : > { %1129 = vmax.xlane.f32.xlu1 %v1128_v45 }
 0x336   : > { %v1125_v46 = vsel %vm1124_vm1, %v1116_v44, -inf }
 0x337   : > { %1126 = vmax.xlane.f32.xlu0 %v1125_v46 }
 0x3a4   : > { %v2407_v47 = vpop.f32.mrf.mxu0 }
 0x3a5   : > { %v1405_v50 = vadd.f32 %v2407_v47, %v2207_v39 }
 0x3a6   : > { %v1399_v48 = vpop.f32.mrf.mxu0 }
 0x3a7   : > { %v1400_v49 = vadd.f32 %v2207_v39, %v1399_v48  ;;  %v1411_v52 = vsel %vm1124_vm1, %v1405_v50, -inf  ;;  %v1025_v39 = vld [vmem:[%s2830_s27 + $0x60] sm:$0xff] }
 0x3a9   : > { %v1408_v51 = vsel %vm1124_vm1, %v1400_v49, -inf }
 0x3aa   : > { %1409 = vmax.xlane.f32.xlu0 %v1408_v51 }
 0x3ae   : > { %1412 = vmax.xlane.f32.xlu0 %v1411_v52 }
 0x3be   : > { %v1130_v53 = vpop.xlane.xlu1 %1129 }
 0x3bf   : > { %v1132_v54 = vsub.f32 %v1121_v42, %v1130_v53  ;;  %v1023_v42 = vld [vmem:[%s2830_s27 + $0x50] sm:$0xff] }
 0x3c0   : > { %v1127_v55 = vpop.xlane.xlu0 %1126 }
 0x3c1   : > { %v1135_v56 = vmul.f32 1.442695, %v1132_v54  ;;  %v1131_v57 = vsub.f32 %v1116_v44, %v1127_v55  ;;  %v1021_v44 = vld [vmem:[%s2830_s27 + $0x40] sm:$0xff] }
 0x3c3   : > { %2515 = vpow2.f32 %v1135_v56  ;;  %v1133_v58 = vmul.f32 1.442695, %v1131_v57 }
 0x3c5   : > { %2517 = vpow2.f32 %v1133_v58 }
 0x3d0   : > { %v2516_v59 = vpop.eup %2515 }
 0x3d1   : > { %v1140_v60 = vsel %vm1124_vm1, %v2516_v59, 0.0 }
 0x3d2   : > { %v2518_v61 = vpop.eup %2517  ;;  %1141 = vadd.xlane.f32.xlu0 %v1140_v60  ;;  %v1676_v60 = vld [vmem:[%s2854_s30 + $0xf8] sm:$0xff] }
 0x3d3   : > { %v1137_v62 = vsel %vm1124_vm1, %v2518_v61, 0.0 }
 0x3d4   : > { %1138 = vadd.xlane.f32.xlu1 %v1137_v62  ;;  %v1674_v62 = vld [vmem:[%s2854_s30 + $0xe8] sm:$0xff] }
 0x433   : > { %v1410_v63 = vpop.xlane.xlu0 %1409 }
 0x434   : > { %v1414_v0 = vsub.f32 %v1400_v49, %v1410_v63  ;;  %v1673_v63 = vld [vmem:[%s2854_s30 + $0xe0] sm:$0xff] }
 0x436   : > { %v1416_v1 = vmul.f32 1.442695, %v1414_v0  ;;  %v1672_v0 = vld [vmem:[%s2854_s30 + $0xd8] sm:$0xff] }
 0x437   : > { %v1413_v2 = vpop.xlane.xlu0 %1412 }
 0x438   : > { %2519 = vpow2.f32 %v1416_v1  ;;  %v1415_v3 = vsub.f32 %v1405_v50, %v1413_v2  ;;  %v2216_v50 = vld [vmem:[%s3275_s16] ss:$0 sm:$0xff]  ;;  %v1671_v1 = vld [vmem:[%s2854_s30 + $0xd0] sm:$0xff] }
 0x43a   : > { %v1418_v4 = vmul.f32 1.442695, %v1415_v3 }
 0x43c   : > { %2521 = vpow2.f32 %v1418_v4 }
 0x445   : > { %v2520_v5 = vpop.eup %2519 }
 0x446   : > { %v1420_v6 = vsel %vm1124_vm1, %v2520_v5, 0.0 }
 0x447   : > { %1421 = vadd.xlane.f32.xlu1 %v1420_v6 }
 0x449   : > { %v2522_v7 = vpop.eup %2521 }
 0x44a   : > { %v1423_v8 = vsel %vm1124_vm1, %v2522_v7, 0.0 }
 0x44b   : > { %1424 = vadd.xlane.f32.xlu0 %v1423_v8  ;;  %v1670_v8 = vld [vmem:[%s2854_s30 + $0xc8] sm:$0xff] }
 0x458   : > { %1434 = vrot.lane.b32.xlu1 %v1010_v32, %s2642_s2  ;;  %v1028_v32 = vld [vmem:[%s2830_s27 + $0x78] sm:$0xff] }
 0x45b   : > { %v1142_v10 = vpop.xlane.xlu0 %1141 }
 0x45c   : > { %2523 = vrcp.f32 %v1142_v10  ;;  %v1669_v10 = vld [vmem:[%s2854_s30 + $0xc0] sm:$0xff] }
 0x45d   : > { %v1139_v11 = vpop.xlane.xlu1 %1138 }
 0x45e   : > { %2525 = vrcp.f32 %v1139_v11  ;;  %v1668_v11 = vld [vmem:[%s2854_s30 + $0xb8] sm:$0xff] }
 0x461   : > { %1432 = vrot.lane.b32.xlu0 %v2965_v34, %s2642_s2 }
 0x469   : > { %v2524_v13 = vpop.eup %2523 }
 0x46a   : > { %v1146_v18 = vmul.f32 %v2524_v13, %v2516_v59  ;;  %v1666_v13 = vld [vmem:[%s2854_s30 + $0xa8] sm:$0xff] }
 0x46b   : > { %v2526_v16 = vpop.eup %2525 }
 0x46c   : > { %v1145_v17 = vmul.f32 %v2526_v16, %v2518_v61  ;;  %v1675_v61 = vld [vmem:[%s2854_s30 + $0xf0] sm:$0xff]  ;;  %v1665_v16 = vld [vmem:[%s2854_s30 + $0xa0] sm:$0xff] }
 0x46e   : > { %2379 = vmatprep.mubr.msk.f32.mxu1 %vm1124_vm1, %v1145_v17  ;;  %v1664_v17 = vld [vmem:[%s2854_s30 + $0x98] sm:$0xff] }
 0x46f   : > { %2380 = vmatmul.mubr.msk.f32.vlgmr.msra.gmra.mxu1 %vm1124_vm1, %v1146_v18  ;;  %v1663_v18 = vld [vmem:[%s2854_s30 + $0x90] sm:$0xff] }
 0x470   : > { %2383 = vmatpush3.msra.mxu1 %v1020_v12  ;;  %v1667_v12 = vld [vmem:[%s2854_s30 + $0xb0] sm:$0xff] }
 0x471   : > { %2384 = vmatprep.subr.mxu1 %v1019_v19 }
 0x472   : > { %2385 = vmatpush3.msra.mxu1 %v1019_v19  ;;  %v1662_v19 = vld [vmem:[%s2854_s30 + $0x88] sm:$0xff] }
 0x473   : > { %2386 = vmatprep.subr.mxu1 %v1018_v21 }
 0x474   : > { %2387 = vmatpush3.msra.mxu1 %v1018_v21  ;;  %v1661_v21 = vld [vmem:[%s2854_s30 + $0x80] sm:$0xff] }
 0x475   : > { %2388 = vmatprep.subr.mxu1 %v1017_v22 }
 0x476   : > { %2389 = vmatpush3.msra.mxu1 %v1017_v22  ;;  %v1660_v22 = vld [vmem:[%s2854_s30 + $0x78] sm:$0xff] }
 0x477   : > { %2390 = vmatprep.subr.mxu1 %v1016_v23 }
 0x478   : > { %2391 = vmatpush3.msra.mxu1 %v1016_v23  ;;  %v1659_v23 = vld [vmem:[%s2854_s30 + $0x70] sm:$0xff] }
 0x479   : > { %2392 = vmatprep.subr.mxu1 %v1015_v24 }
 0x47a   : > { %2393 = vmatpush3.msra.mxu1 %v1015_v24  ;;  %v1658_v24 = vld [vmem:[%s2854_s30 + $0x68] sm:$0xff] }
 0x47b   : > { %2394 = vmatprep.subr.mxu1 %v1014_v25 }
 0x47c   : > { %2395 = vmatpush3.msra.mxu1 %v1014_v25  ;;  %v1657_v25 = vld [vmem:[%s2854_s30 + $0x60] sm:$0xff] }
 0x47d   : > { %2396 = vmatprep.subr.mxu1 %v1013_v26 }
 0x47e   : > { %2397 = vmatpush3.msra.mxu1 %v1013_v26  ;;  %v1656_v26 = vld [vmem:[%s2854_s30 + $0x58] sm:$0xff] }
 0x47f   : > { %1689 = vmatprep.subr.mxu1 %v1676_v60  ;;  %v1831_v60 = vld [vmem:[%s2864_s1 + $0xe8] sm:$0xff] }
 0x4d0   : > { %v1422_v27 = vpop.xlane.xlu1 %1421 }
 0x4d1   : > { %2527 = vrcp.f32 %v1422_v27  ;;  %v1655_v27 = vld [vmem:[%s2854_s30 + $0x50] sm:$0xff] }
 0x4d4   : > { %v1435_v28 = vpop.permute.xlu1 %1434  ;;  %v1425_v29 = vpop.xlane.xlu0 %1424 }
 0x4d5   : > { %2529 = vrcp.f32 %v1425_v29  ;;  %2408 = vmatprep.subr.mxu0 %v1435_v28  ;;  %v1653_v29 = vld [vmem:[%s2854_s30 + $0x40] sm:$0xff] }
 0x4d6   : > { %2409 = vmatpush3.msra.mxu0 %v1435_v28  ;;  %v1654_v28 = vld [vmem:[%s2854_s30 + $0x48] sm:$0xff] }
 0x4d8   : > { %v1433_v31 = vpop.permute.xlu0 %1432 }
 0x4d9   : > { %2410 = vmatprep.subr.mxu0 %v1433_v31 }
 0x4da   : > { %2411 = vmatpush3.msra.mxu0 %v1433_v31  ;;  %v1652_v31 = vld [vmem:[%s2854_s30 + $0x38] sm:$0xff] }
 0x4db   : > { %2415 = vmatprep.subr.mxu0 %v1028_v32 }
 0x4de   : > { %v2528_v33 = vpop.eup %2527 }
 0x4df   : > { %v1428_v34 = vmul.f32 %v2528_v33, %v2520_v5  ;;  %v1650_v33 = vld [vmem:[%s2854_s30 + $0x28] sm:$0xff] }
 0x4e1   : > { %2412 = vmatprep.mubr.msk.f32.mxu0 %vm1124_vm1, %v1428_v34  ;;  %v1649_v34 = vld [vmem:[%s2854_s30 + $0x20] sm:$0xff] }
 0x4e2   : > { %v2530_v35 = vpop.eup %2529 }
 0x4e3   : > { %v1429_v36 = vmul.f32 %v2530_v35, %v2522_v7  ;;  %v1648_v35 = vld [vmem:[%s2854_s30 + $0x18] sm:$0xff] }
 0x4e5   : > { %2413 = vmatmul.mubr.msk.f32.vlgmr.msra.gmra.mxu0 %vm1124_vm1, %v1429_v36  ;;  %v1647_v36 = vld [vmem:[%s2854_s30 + $0x10] sm:$0xff] }
 0x4e6   : > { %2416 = vmatpush3.msra.mxu0 %v1028_v32  ;;  %v1651_v32 = vld [vmem:[%s2854_s30 + $0x30] sm:$0xff] }
 0x4e7   : > { %2417 = vmatprep.subr.mxu0 %v1027_v37 }
 0x4e8   : > { %2418 = vmatpush3.msra.mxu0 %v1027_v37  ;;  %v1646_v37 = vld [vmem:[%s2854_s30 + $0x8] sm:$0xff] }
 0x4e9   : > { %2419 = vmatprep.subr.mxu0 %v1026_v38 }
 0x4ea   : > { %2420 = vmatpush3.msra.mxu0 %v1026_v38  ;;  %v1645_v38 = vld [vmem:[%s2854_s30] sm:$0xff] }
 0x4eb   : > { %2421 = vmatprep.subr.mxu0 %v1025_v39 }
 0x4ec   : > { %2422 = vmatpush3.msra.mxu0 %v1025_v39 }
 0x4ed   : > { %2423 = vmatprep.subr.mxu0 %v1024_v41 }
 0x4ee   : > { %2424 = vmatpush3.msra.mxu0 %v1024_v41 }
 0x4ef   : > { %2425 = vmatprep.subr.mxu0 %v1023_v42 }
 0x4f0   : > { %2426 = vmatpush3.msra.mxu0 %v1023_v42 }
 0x4f1   : > { %2427 = vmatprep.subr.mxu0 %v1022_v43 }
 0x4f2   : > { %2428 = vmatpush3.msra.mxu0 %v1022_v43 }
 0x4f3   : > { %2429 = vmatprep.subr.mxu0 %v1021_v44 }
 0x4f4   : > { %2430 = vmatpush3.msra.mxu0 %v1021_v44 }
 0x52f   : > { %v2381_v45 = vpop.f32.mrf.mxu1 }
 0x531   : > { %v1219_v46 = vpop.f32.mrf.mxu1 }
 0x532   : > { %2398 = vmatprep.mubr.msk.f32.mxu1 %vm1036_vm0, %v1219_v46 }
 0x533   : > { %2399 = vmatmul.mubr.msk.f32.vlgmr.msra.gmra.mxu1 %vm1036_vm0, %v2381_v45 }
 0x534   : > { %1753 = vmatprep.mubr.f32.mxu1 %v2641_v30  ;;  %1690 = vmatpush1.msra.mxu1 %v1675_v61  ;;  %v1830_v61 = vld [vmem:[%s2864_s1 + $0xe0] sm:$0xff] }
 0x535   : > { %1691 = vmatprep.subr.mxu1 %v1674_v62  ;;  %v1814_v62 = vld [vmem:[%s2864_s1 + $0x60] sm:$0xff] }
 0x536   : > { %1692 = vmatpush1.msra.mxu1 %v1673_v63  ;;  %v1829_v63 = vld [vmem:[%s2864_s1 + $0xd8] sm:$0xff] }
 0x537   : > { %1693 = vmatprep.subr.mxu1 %v1672_v0  ;;  %v1813_v0 = vld [vmem:[%s2864_s1 + $0x58] sm:$0xff] }
 0x538   : > { %1694 = vmatpush1.msra.mxu1 %v1671_v1  ;;  %v1828_v1 = vld [vmem:[%s2864_s1 + $0xd0] sm:$0xff] }
 0x539   : > { %1695 = vmatprep.subr.mxu1 %v1670_v8  ;;  %v1808_v8 = vld [vmem:[%s2864_s1 + $0x30] sm:$0xff] }
 0x53a   : > { %1696 = vmatpush1.msra.mxu1 %v1669_v10  ;;  %v1823_v10 = vld [vmem:[%s2864_s1 + $0xa8] sm:$0xff] }
 0x53b   : > { %1697 = vmatprep.subr.mxu1 %v1668_v11  ;;  %v1807_v11 = vld [vmem:[%s2864_s1 + $0x28] sm:$0xff] }
 0x53c   : > { %1698 = vmatpush1.msra.mxu1 %v1667_v12  ;;  %v1822_v12 = vld [vmem:[%s2864_s1 + $0xa0] sm:$0xff] }
 0x53d   : > { %1699 = vmatprep.subr.mxu1 %v1666_v13  ;;  %v1806_v13 = vld [vmem:[%s2864_s1 + $0x20] sm:$0xff] }
 0x53e   : > { %1700 = vmatpush1.msra.mxu1 %v1665_v16  ;;  %v1821_v16 = vld [vmem:[%s2864_s1 + $0x98] sm:$0xff] }
 0x53f   : > { %1701 = vmatprep.subr.mxu1 %v1664_v17  ;;  %v1805_v17 = vld [vmem:[%s2864_s1 + $0x18] sm:$0xff] }
 0x540   : > { %1702 = vmatpush1.msra.mxu1 %v1663_v18  ;;  %v1820_v18 = vld [vmem:[%s2864_s1 + $0x90] sm:$0xff] }
 0x541   : > { %1703 = vmatprep.subr.mxu1 %v1662_v19  ;;  %v1804_v19 = vld [vmem:[%s2864_s1 + $0x10] sm:$0xff] }
 0x542   : > { %1704 = vmatpush1.msra.mxu1 %v1661_v21  ;;  %v1819_v21 = vld [vmem:[%s2864_s1 + $0x88] sm:$0xff] }
 0x543   : > { %1705 = vmatprep.subr.mxu1 %v1660_v22  ;;  %v1803_v22 = vld [vmem:[%s2864_s1 + $0x8] sm:$0xff] }
 0x544   : > { %1706 = vmatpush1.msra.mxu1 %v1659_v23  ;;  %v1818_v23 = vld [vmem:[%s2864_s1 + $0x80] sm:$0xff] }
 0x545   : > { %1707 = vmatprep.subr.mxu1 %v1658_v24  ;;  %v1802_v24 = vld [vmem:[%s2864_s1] sm:$0xff] }
 0x546   : > { %1708 = vmatpush1.msra.mxu1 %v1657_v25  ;;  %v1677_v25 = vld [vmem:[%s2859_s0] sm:$0x3] }
 0x547   : > { %1709 = vmatprep.subr.mxu1 %v1656_v26  ;;  %v1682_v26 = vrot.slane %v1677_v25, %v848_v15 }
 0x548   : > { %1710 = vmatpush1.msra.mxu1 %v1655_v27  ;;  %v1686_v27 = vrot.slane %v1677_v25, %v852_v20 }
 0x549   : > { %1711 = vmatprep.subr.mxu1 %v1654_v28 }
 0x54a   : > { %1712 = vmatpush1.msra.mxu1 %v1653_v29 }
 0x54b   : > { %1713 = vmatprep.subr.mxu1 %v1652_v31 }
 0x54c   : > { %1714 = vmatpush1.msra.mxu1 %v1651_v32 }
 0x54d   : > { %1715 = vmatprep.subr.mxu1 %v1650_v33 }
 0x54e   : > { %1716 = vmatpush1.msra.mxu1 %v1649_v34 }
 0x54f   : > { %1717 = vmatprep.subr.mxu1 %v1648_v35 }
 0x550   : > { %1718 = vmatpush1.msra.mxu1 %v1647_v36 }
 0x551   : > { %1719 = vmatprep.subr.mxu1 %v1646_v37 }
 0x552   : > { %1720 = vmatpush1.msra.mxu1 %v1645_v38 }
 0x5a5   : > { %v2414_v47 = vpop.f32.mrf.mxu0 }
 0x5a7   : > { %v1510_v48 = vpop.f32.mrf.mxu0 }
 0x5a8   : > { %2431 = vmatprep.mubr.msk.f32.mxu0 %vm1036_vm0, %v1510_v48 }
 0x5a9   : > { %2432 = vmatmul.mubr.msk.f32.vlgmr.msra.gmra.mxu0 %vm1036_vm0, %v2414_v47 }
 0x5f3   : > { %v2400_v49 = vpop.f32.mrf.mxu1 }
 0x5f4   : > { %v1316_v52 = vadd.f32 %v2400_v49, %v2216_v50 }
 0x5f5   : > { %v1300_v51 = vpop.f32.mrf.mxu1 }
 0x5f6   : > { %v1315_v54 = vadd.f32 %v2216_v50, %v1300_v51  ;;  %v2225_v50 = vld [vmem:[%s3276_s22] ss:$0 sm:$0xff] }
 0x669   : > { %v2433_v53 = vpop.f32.mrf.mxu0 }
 0x66a   : > { %v1601_v55 = vadd.f32 %v2433_v53, %v1316_v52  ;;  %v2226_v52 = vld [vmem:[%s3278_s26] ss:$0 sm:$0xff] }
 0x66b   : > { %v1591_v56 = vpop.f32.mrf.mxu0 }
 0x66c   : > { %v1600_v57 = vadd.f32 %v1591_v56, %v1315_v54  ;;  %v1603_v58 = vadd.f32 %v1601_v55, %v2938_v9  ;;  %v1833_v56 = vld [vmem:[%s2864_s1 + $0xf8] sm:$0xff] }
 0x66d   : > { %2295 = vmatprep.subr.mxu0 %v1833_v56 }
 0x66e   : > { %1608 = vadd.xlane.f32.xlu0 %v1603_v58  ;;  %v1602_v59 = vadd.f32 %v1600_v57, %v2901_v40  ;;  %v1817_v57 = vld [vmem:[%s2864_s1 + $0x78] sm:$0xff] }
 0x66f   : > { %2296 = vmatpush3.msra.mxu0 %v1817_v57 }
 0x670   : > { %1606 = vadd.xlane.f32.xlu1 %v1602_v59 }
 0x6f7   : > { %v1609_v9 = vpop.xlane.xlu0 %1608 }
 0x6f8   : > { %v1612_v2 = vmul.f32 0.0078125, %v1609_v9  ;;  %v1812_v9 = vld [vmem:[%s2864_s1 + $0x50] sm:$0xff] }
 0x6f9   : > { %v1607_v40 = vpop.xlane.xlu1 %1606 }
 0x6fa   : > { %v3029_v3 = vsub.f32 %v1603_v58, %v1612_v2  ;;  %v1611_v4 = vmul.f32 0.0078125, %v1607_v40  ;;  %v1832_v58 = vld [vmem:[%s2864_s1 + $0xf0] sm:$0xff]  ;;  %v1827_v2 = vld [vmem:[%s2864_s1 + $0xc8] sm:$0xff] }
 0x6fb   : > { %2297 = vmatprep.subr.mxu0 %v1832_v58  ;;  %v1811_v40 = vld [vmem:[%s2864_s1 + $0x48] sm:$0xff] }
 0x6fc   : > { %v3031_v5 = vsub.f32 %v1602_v59, %v1611_v4  ;;  %v1616_v6 = vmul.f32 %v3029_v3, %v3029_v3  ;;  %v1816_v59 = vld [vmem:[%s2864_s1 + $0x70] sm:$0xff]  ;;  %v1810_v4 = vld [vmem:[%s2864_s1 + $0x40] sm:$0xff] }
 0x6fd   : > { %2298 = vmatpush3.msra.mxu0 %v1816_v59 }
 0x6fe   : > { %1619 = vadd.xlane.f32.xlu0 %v1616_v6  ;;  %v1615_v7 = vmul.f32 %v3031_v5, %v3031_v5  ;;  %2299 = vmatprep.subr.mxu0 %v1831_v60  ;;  %v1809_v6 = vld [vmem:[%s2864_s1 + $0x38] sm:$0xff] }
 0x700   : > { %1617 = vadd.xlane.f32.xlu1 %v1615_v7  ;;  %v1824_v7 = vld [vmem:[%s2864_s1 + $0xb0] sm:$0xff] }
 0x787   : > { %v1620_v39 = vpop.xlane.xlu0 %1619 }
 0x788   : > { %v1622_v41 = vmul.f32 0.0078125, %v1620_v39 }
 0x789   : > { %v1618_v42 = vpop.xlane.xlu1 %1617 }
 0x78a   : > { %v1624_v43 = vadd.f32 1e-12, %v1622_v41  ;;  %v1621_v44 = vmul.f32 0.0078125, %v1618_v42 }
 0x78c   : > { %2531 = vrsqrt.f32 %v1624_v43  ;;  %v1623_v45 = vadd.f32 1e-12, %v1621_v44 }
 0x78e   : > { %2533 = vrsqrt.f32 %v1623_v45 }
 0x799   : > { %v2532_v46 = vpop.eup %2531 }
 0x79a   : > { %v1628_v49 = vmul.f32 %v2532_v46, %v3029_v3  ;;  %v1826_v3 = vld [vmem:[%s2864_s1 + $0xc0] sm:$0xff] }
 0x79b   : > { %v2534_v47 = vpop.eup %2533 }
 0x79c   : > { %v1627_v48 = vmul.f32 %v2534_v47, %v3031_v5  ;;  %v1636_v54 = vmul.f32 %v2225_v50, %v1628_v49  ;;  %v1825_v5 = vld [vmem:[%s2864_s1 + $0xb8] sm:$0xff] }
 0x79e   : > { %v1635_v51 = vmul.f32 %v2225_v50, %v1627_v48  ;;  %v3079_v55 = vadd.f32 %v2226_v52, %v1636_v54 }
 0x7a0   : > { %v3075_v53 = vadd.f32 %v2226_v52, %v1635_v51 }
 0x7a2   : > { %1754 = vmatmul.mubr.f32.vlgmr.msra.gmra.mxu1 %v3075_v53 }
 0x7a3   : > { %1759 = vmatprep.mubr.f32.mxu1 %v2641_v30  ;;  %v1815_v30 = vld [vmem:[%s2864_s1 + $0x68] sm:$0xff] }
 0x7a4   : > { %2300 = vmatpush3.msra.mxu0 %v1815_v30 }
 0x7a5   : > { %2301 = vmatprep.subr.mxu0 %v1830_v61 }
 0x7a6   : > { %1760 = vmatmul.mubr.f32.gmra.mxu1 %v3079_v55  ;;  %2302 = vmatpush3.msra.mxu0 %v1814_v62 }
 0x7a7   : > { %2303 = vmatprep.subr.mxu0 %v1829_v63 }
 0x7a8   : > { %2304 = vmatpush3.msra.mxu0 %v1813_v0 }
 0x7a9   : > { %2305 = vmatprep.subr.mxu0 %v1828_v1 }
 0x7aa   : > { %2306 = vmatpush3.msra.mxu0 %v1812_v9 }
 0x7ab   : > { %2307 = vmatprep.subr.mxu0 %v1827_v2 }
 0x7ac   : > { %2308 = vmatpush3.msra.mxu0 %v1811_v40 }
 0x7ad   : > { %2309 = vmatprep.subr.mxu0 %v1826_v3 }
 0x7ae   : > { %2310 = vmatpush3.msra.mxu0 %v1810_v4 }
 0x7af   : > { %2311 = vmatprep.subr.mxu0 %v1825_v5 }
 0x7b0   : > { %2312 = vmatpush3.msra.mxu0 %v1809_v6 }
 0x7b1   : > { %2313 = vmatprep.subr.mxu0 %v1824_v7  ;;  %v2227_v7 = vld [vmem:[%s737_s25] ss:$0 sm:$0xff] }
 0x7b2   : > { %2314 = vmatpush3.msra.mxu0 %v1808_v8 }
 0x7b3   : > { %2315 = vmatprep.subr.mxu0 %v1823_v10 }
 0x7b4   : > { %2316 = vmatpush3.msra.mxu0 %v1807_v11 }
 0x7b5   : > { %2317 = vmatprep.subr.mxu0 %v1822_v12 }
 0x7b6   : > { %2318 = vmatpush3.msra.mxu0 %v1806_v13 }
 0x7b7   : > { %2319 = vmatprep.subr.mxu0 %v1821_v16 }
 0x7b8   : > { %2320 = vmatpush3.msra.mxu0 %v1805_v17 }
 0x7b9   : > { %2321 = vmatprep.subr.mxu0 %v1820_v18 }
 0x7ba   : > { %2322 = vmatpush3.msra.mxu0 %v1804_v19 }
 0x7bb   : > { %2323 = vmatprep.subr.mxu0 %v1819_v21 }
 0x7bc   : > { %2324 = vmatpush3.msra.mxu0 %v1803_v22 }
 0x7bd   : > { %2325 = vmatprep.subr.mxu0 %v1818_v23 }
 0x7be   : > { %2326 = vmatpush3.msra.mxu0 %v1802_v24 }
 0x862   : > { %v1755_v28 = vpop.f32.mrf.mxu1 }
 0x863   : > { %v1756_v29 = vadd.f32 %v1755_v28, %v1682_v26 }
 0x864   : > { %v1757_v31 = vpop.f32.mrf.mxu1 }
 0x865   : > { %v1770_v32 = vmul.f32 0.044715, %v1756_v29  ;;  %v1758_v33 = vadd.f32 %v1757_v31, %v1686_v27  ;;  %v1766_v62 = vmul.f32 0.5, %v1756_v29 }
 0x866   : > { %v1761_v34 = vpop.f32.mrf.mxu1 }
 0x867   : > { %v1774_v35 = vmul.f32 %v1770_v32, %v1756_v29  ;;  %v1771_v36 = vmul.f32 0.044715, %v1758_v33  ;;  %v1762_v37 = vadd.f32 %v1761_v34, %v1682_v26  ;;  %v1767_v60 = vmul.f32 0.5, %v1758_v33 }
 0x868   : > { %v1763_v38 = vpop.f32.mrf.mxu1 }
 0x869   : > { %v1778_v39 = vmul.f32 %v1774_v35, %v1756_v29  ;;  %v1775_v41 = vmul.f32 %v1771_v36, %v1758_v33  ;;  %v1772_v42 = vmul.f32 0.044715, %v1762_v37  ;;  %v1764_v43 = vadd.f32 %v1763_v38, %v1686_v27  ;;  %v2228_v35 = vld [vmem:[%s740_s6] ss:$0 sm:$0xff] }
 0x86a   : > { %v1768_v3 = vmul.f32 0.5, %v1762_v37 }
 0x86b   : > { %v1782_v44 = vadd.f32 %v1778_v39, %v1756_v29  ;;  %v1776_v45 = vmul.f32 %v1772_v42, %v1762_v37  ;;  %v1773_v15 = vmul.f32 0.044715, %v1764_v43  ;;  %v1779_v46 = vmul.f32 %v1775_v41, %v1758_v33 }
 0x86c   : > { %v1769_v2 = vmul.f32 0.5, %v1764_v43 }
 0x86d   : > { %v1777_v14 = vmul.f32 %v1773_v15, %v1764_v43  ;;  %v1783_v20 = vadd.f32 %v1779_v46, %v1758_v33  ;;  %v1786_v47 = vmul.f32 0.7978846, %v1782_v44  ;;  %v1780_v48 = vmul.f32 %v1776_v45, %v1762_v37 }
 0x86f   : > { %v1787_v49 = vmul.f32 0.7978846, %v1783_v20  ;;  %2535 = vtanh.f32 %v1786_v47  ;;  %v1781_v50 = vmul.f32 %v1777_v14, %v1764_v43  ;;  %v1784_v51 = vadd.f32 %v1780_v48, %v1762_v37  ;;  %v2229_v37 = vld [vmem:[%s743_s9] ss:$0 sm:$0xff] }
 0x871   : > { %2537 = vtanh.f32 %v1787_v49  ;;  %v1785_v52 = vadd.f32 %v1781_v50, %v1764_v43  ;;  %v1788_v54 = vmul.f32 0.7978846, %v1784_v51 }
 0x873   : > { %v1789_v56 = vmul.f32 0.7978846, %v1785_v52  ;;  %2539 = vtanh.f32 %v1788_v54 }
 0x875   : > { %2541 = vtanh.f32 %v1789_v56 }
 0x87c   : > { %v2536_v57 = vpop.eup %2535 }
 0x87d   : > { %v1794_v59 = vadd.f32 1.0, %v2536_v57 }
 0x87e   : > { %v2538_v58 = vpop.eup %2537 }
 0x87f   : > { %v1795_v30 = vadd.f32 1.0, %v2538_v58  ;;  %v1798_v1 = vmul.f32 %v1794_v59, %v1766_v62 }
 0x880   : > { %v2540_v61 = vpop.eup %2539 }
 0x881   : > { %v1799_v63 = vmul.f32 %v1795_v30, %v1767_v60  ;;  %v1796_v9 = vadd.f32 1.0, %v2540_v61 }
 0x882   : > { %v2542_v0 = vpop.eup %2541 }
 0x883   : > { %1905 = vmatprep.mubr.f32.mxu0 %v1799_v63  ;;  %v1797_v40 = vadd.f32 1.0, %v2542_v0  ;;  %v1800_v5 = vmul.f32 %v1796_v9, %v1768_v3 }
 0x884   : > { %1906 = vmatmul.mubr.f32.vlgmr.msra.gmra.mxu0 %v1798_v1 }
 0x885   : > { %v1801_v4 = vmul.f32 %v1797_v40, %v1769_v2 }
 0x887   : > { %1910 = vmatprep.mubr.f32.mxu0 %v1801_v4 }
 0x888   : > { %1911 = vmatmul.mubr.f32.gmra.mxu0 %v1800_v5 }
 0x944   : > { %v2327_v6 = vpop.f32.mrf.mxu0 }
 0x946   : > { %v2328_v8 = vpop.f32.mrf.mxu0 }
 0x947   : > { %v2329_v10 = vadd.f32 %v2328_v8, %v2327_v6 }
 0x948   : > { %v2330_v11 = vpop.f32.mrf.mxu0 }
 0x949   : > { %v1908_v12 = vadd.f32 %v2329_v10, %v2227_v7 }
 0x94a   : > { %v2331_v13 = vpop.f32.mrf.mxu0 }
 0x94b   : > { %v2332_v16 = vadd.f32 %v2331_v13, %v2330_v11  ;;  %v1916_v17 = vadd.f32 %v1908_v12, %v3075_v53 }
 0x94d   : > { %v1913_v18 = vadd.f32 %v2332_v16, %v2227_v7  ;;  %1920 = vadd.xlane.f32.xlu1 %v1916_v17 }
 0x94f   : > { %v1917_v19 = vadd.f32 %v1913_v18, %v3079_v55 }
 0x951   : > { %1922 = vadd.xlane.f32.xlu0 %v1917_v19 }
 0x9d6   : > { %v1921_v21 = vpop.xlane.xlu1 %1920 }
 0x9d7   : > { %v1924_v22 = vmul.f32 0.0078125, %v1921_v21 }
 0x9d9   : > { %v1926_v23 = vsub.f32 %v1916_v17, %v1924_v22 }
 0x9da   : > { %v1923_v24 = vpop.xlane.xlu0 %1922 }
 0x9db   : > { %v1925_v25 = vmul.f32 0.0078125, %v1923_v24  ;;  %v1928_v26 = vmul.f32 %v1926_v23, %v1926_v23 }
 0x9dd   : > { %v1927_v27 = vsub.f32 %v1917_v19, %v1925_v25  ;;  %1930 = vadd.xlane.f32.xlu1 %v1928_v26 }
 0x9df   : > { %v1929_v28 = vmul.f32 %v1927_v27, %v1927_v27 }
 0x9e1   : > { %1932 = vadd.xlane.f32.xlu0 %v1929_v28 }
 0xa66   : > { %v1931_v29 = vpop.xlane.xlu1 %1930 }
 0xa67   : > { %v1934_v31 = vmul.f32 0.0078125, %v1931_v29 }
 0xa69   : > { %v1936_v53 = vadd.f32 1e-12, %v1934_v31 }
 0xa6a   : > { %v1933_v32 = vpop.xlane.xlu0 %1932 }
 0xa6b   : > { %2543 = vrsqrt.f32 %v1936_v53  ;;  %v1935_v33 = vmul.f32 0.0078125, %v1933_v32 }
 0xa6d   : > { %v1937_v55 = vadd.f32 1e-12, %v1935_v33 }
 0xa6f   : > { %2545 = vrsqrt.f32 %v1937_v55 }
 0xa78   : > { %v2544_v34 = vpop.eup %2543 }
 0xa79   : > { %v1940_v36 = vmul.f32 %v2544_v34, %v1926_v23 }
 0xa7b   : > { %v1948_v38 = vmul.f32 %v2228_v35, %v1940_v36 }
 0xa7c   : > { %v2546_v39 = vpop.eup %2545 }
 0xa7d   : > { %v1956_v41 = vadd.f32 %v2229_v37, %v1948_v38  ;;  %v1941_v42 = vmul.f32 %v2546_v39, %v1927_v27 }
 0xa7f   : > { %1958 = vst [vmem:[#allocation2] sm:$0xff] %v1956_v41  ;;  %v1949_v43 = vmul.f32 %v2228_v35, %v1941_v42  ;;  %1963 = sbr.rel (%p2230_p1) target bundleno = 2693 (0xa85), region = 92 }
 0xa81   : > { %v1957_v44 = vadd.f32 %v2229_v37, %v1949_v43 }
 0xa83   : > { %1959 = vst [vmem:[#allocation2 + $0x8] sm:$0xff] %v1957_v44 }
 0xa84   : > { %1964 = vst [vmem:[%s2878_s18] sm:$0xff] %v1956_v41  ;;  %1965 = vst [vmem:[%s2878_s18 + $0x8] sm:$0xff] %v1957_v44 }
 0xa85 PF: > { %s3281_s6 = sld [smem:[#allocation10_spill]]  ;;  %s1980_s30 = sshll.u32 %s2878_s18, 4  ;;  %s3146_s30 = int_to_ptr.vmem [resolvable:$true] %s1980_s30 }
 0xa86   : > { %s3282_s17 = sld [smem:[#allocation7_spill]]  ;;  %s2547_s4 = scalar_lea.vmem %s3146_s30, 256 }
 0xa87   : > { %s3284_s27 = sld [smem:[#allocation30_spill]]  ;;  %p2548_p2 = scmp.ne.s32.totalorder %s3146_s30, %s2547_s4 }
 0xa88   : > { %s2643_s5 = smov [#allocation3]  }
 0xa89   : > { %p2549_p4 = pnand %p2548_p2, %p2780_p3  ;;  %s2551_s10 = sshll.u32 %s2643_s5, 4  ;;  %s2552_s10 = int_to_ptr.vmem [resolvable:$false] %s2551_s10 }
 0xa8a   : > { %s2553_s26 = scalar_lea.vmem %s2552_s10, 512  ;;  %p2554_p6 = scmp.lt.s32.totalorder %s3146_s30, %s2552_s10 }
 0xa8b   : > { %s2240_s15 = sshll.u32 %s3281_s6, 8  ;;  %p2550_p5 = pneg %p2549_p4 }
 0xa8c   : > { %s3286_s24 = sand.u32 1, %s3282_s17   ;;  %p2555_p7 = scmp.lt.s32.totalorder %s2553_s26, %s2547_s4 }
 0xa8d   : > { %s3285_s16 = smov %s3284_s27  ;;  %s3143_s21 = scalar_lea.hbm %s3284_s27, %s2240_s15 }
 0xa8e   : > { %s3150_s22 = scalar_lea.sflag [#allocation4], %s3286_s24  ;;  %p2556_p8 = por %p2555_p7, %p2554_p6 }
 0xa90   : > { %p2557_p10 = pnand %p2556_p8, %p2550_p5 }
 0xa92   : > { %2560 = shalt.err (!%p2557_p10)
}
 0xa93   : > { %s2561_s18 = scalar_lea.hbm %s3143_s21, 256  ;;  %s2565_s25 = scalar_lea.hbm %s3285_s16, 512 }
 0xa94   : > { %p2562_p11 = scmp.ne.s32.totalorder %s3143_s21, %s2561_s18  ;;  %p2566_p0 = scmp.lt.s32.totalorder %s3143_s21, %s3285_s16 }
 0xa95   : > { %p2567_p1 = scmp.lt.s32.totalorder %s2565_s25, %s2561_s18 }
 0xa96   : > { %p2563_p12 = pnand %p2562_p11, %p2780_p3 }
 0xa97   : > { %p2568_p2 = por %p2567_p1, %p2566_p0 }
 0xa98   : > { %p2564_p13 = pneg %p2563_p12 }
 0xa9a   : > { %p2569_p4 = pnand %p2568_p2, %p2564_p13 }
 0xa9c   : > { %2572 = shalt.err (!%p2569_p4)
}
 0xa9d   : > { %s2644_s2 = smov 128   ;;  %s2645_s23 = smov 8  }
 0xa9e   : > { %2436 = dma.vmem_to_hbm [thread:$0]  (%p2780_p3), %s3146_s30, 256, %s3143_s21, %s3150_s22, %s2644_s2, %s2644_s2, %s2645_s23  }
 0xa9f PF: > { %s3287_s3 = sld [smem:[#allocation13_spill]] }
 0xaa0   : > { %s3288_s6 = sld [smem:[#allocation6_spill]] }
 0xaa5   : > { %p2442_p5 = scmp.ge.s32.totalorder %s3287_s3, 2 }
 0xaa6   : > { %s1995_s15 = sand.u32 1, %s3288_s6  }
 0xaa7   : > { %p2439_p6 = pnand %p2442_p5, %p2790_p9  ;;  %s1996_s29 = scalar_lea.sflag [#allocation4], %s1995_s15 }
 0xaa9   : > { %p2440_p7 = pneg %p2439_p6 }
 0xaab   : > { %2606 = dma.done.wait (%p2440_p7), %s1996_s29, 256  }
 0xaac   : > { %2608 = vsyncadd (%p2440_p7), %s1996_s29, 4294967040  ;;  %s29_s28 = sadd.s32 1, %s3287_s3   ;;  %s3290_s21 = sld [smem:[#allocation7_spill]] }
 0xaad   : > { %p26_p8 = scmp.ge.s32.totalorder %s29_s28, 6   ;;  %s3291_s22 = sld [smem:[#allocation8_spill]] }
 0xaae   : > { %s3292_s23 = sld [smem:[#allocation18_spill]] }
 0xaaf   : > { %s3293_s24 = sld [smem:[#allocation11_spill]]  ;;  %28 = sbr.rel (!%p26_p8) target bundleno = 17 (0x11), region = 166 }
 0xab0   : > { %s3294_s25 = sld [smem:[#allocation12_spill]] }
 0xab1   : > { %s3295_s26 = sld [smem:[#allocation14_spill]] }
 0xab2   : > { %s3296_s27 = sld [smem:[#allocation16_spill]] }
 0xab4   :  { %2001 = vsyncpa [#allocation4], 1 }
 0xab5   :  { %2003 = vsyncpa [#allocation4 + $0x1], 1 }

</bundles_post_ra>
